<compile_context>
chip_gen: v7x
topology: tpu7x:2x2x1
jax: 0.10.0
libtpu: 0.0.40
codegen_flags: <defaults>
</compile_context>

<pallas_src>
import functools

import numpy as np
import jax
import jax.numpy as jnp
from jax import lax
from jax.experimental import pallas as pl
from jax.experimental.pallas import tpu as pltpu

HIST_LEN = 224 * 224            # 50176
COLS = 128
TILE_ROWS = 56                  # 50176 = 7 * 56 * 128; 56 is a multiple of 8
TILE = TILE_ROWS * COLS         # 7168 flat elements per loop step (7 vregs/op)
N_BLOCKS = HIST_LEN // TILE     # 7
SUB_TILES = TILE_ROWS // 8      # 7 (8,128) sub-tiles per wide tile


def _l2loss_kernel(ct_ref, co_ref, loss_ref, *, L):
    """ct_ref/co_ref: flattened (3*L,) int32 cumsum boundaries in SMEM."""
    # Flat-index offsets within one (56,128) tile (constant; hoisted).
    off = (lax.broadcasted_iota(jnp.int32, (TILE_ROWS, COLS), 0) * COLS
           + lax.broadcasted_iota(jnp.int32, (TILE_ROWS, COLS), 1))

    # Hoist all 3*L boundary scalars out of the block loop (cheap SMEM reads).
    ct = [[ct_ref[ch * L + j] for j in range(L)] for ch in range(3)]
    co = [[co_ref[ch * L + j] for j in range(L)] for ch in range(3)]

    def block_body(b, accs):
        # Base offset on the vector side: one splat + vadd per vreg, compared
        # against block-invariant boundary scalars (no per-j scalar subtract).
        off_b = off + b * TILE

        def written_vals_and_hole(c):
            # Value the j-loop writes at flat index k (positive, increasing
            # boundaries) = #{j in [0, L-2] : c[j] <= k}.
            n = jnp.zeros((TILE_ROWS, COLS), jnp.float32)
            m = None
            for j in range(L - 1):
                m = off_b >= c[j]
                n = n + m.astype(jnp.float32)
            # [c[L-2], c[L-1]) is never written -> previous state survives.
            # Reuse the j == L-2 compare mask as the hole's lower bound.
            hole = m & (off_b < c[L - 1])
            return n, hole

        def channel_hist(c, prev):
            n, hole = written_vals_and_hole(c)
            return jnp.where(hole, prev, n)

        h_t = jnp.zeros((TILE_ROWS, COLS), jnp.float32)   # fresh h1 == zeros
        h_o = jnp.zeros((TILE_ROWS, COLS), jnp.float32)   # fresh h2 == zeros
        new_accs = []
        for ch in range(3):                 # stateful carry across channels
            h_t = channel_hist(ct[ch], h_t)
            h_o = channel_hist(co[ch], h_o)
            d = h_t - h_o
            dd = d * d
            # Fold the wide (56,128) tile into an (8,128) accumulator with
            # sublane-aligned static slices (keeps live vregs ~30, no spills).
            small = dd[0:8, :]
            for t in range(1, SUB_TILES):
                small = small + dd[t * 8:(t + 1) * 8, :]
            new_accs.append(accs[ch] + small)
        return tuple(new_accs)

    zero = jnp.zeros((8, COLS), jnp.float32)
    accs = lax.fori_loop(0, N_BLOCKS, block_body, (zero, zero, zero))

    # Batched epilogue: the three per-channel reductions are independent and
    # feed a single vectorized EUP sqrt (no serial reduce->sqrt->add chain).
    rows = jnp.concatenate(
        [jnp.sum(a, axis=0, keepdims=True) for a in accs], axis=0)  # (3, 128)
    ch_sums = jnp.sum(rows, axis=1, keepdims=True)                  # (3, 1)
    loss_ref[0, 0] = jnp.sum(jnp.sqrt(ch_sums))


def l2loss(target, output):
    """target, output: (3, L, 1) float32.  Returns scalar float32 loss."""
    assert target.shape == output.shape
    assert target.shape[0] == 3 and target.shape[2] == 1
    L = target.shape[1]
    assert L >= 2

    # Glue: cumsum of the per-channel values, truncated to int (matches
    # `int(...)` on the assigned cumsum floats for positive inputs).
    # Flattened to 1D so the SMEM footprint stays tiny (no (8,128) padding).
    # TODO(synk): non-increasing / negative / >=224*224 boundaries are not
    # clamped; such inputs would diverge from the numpy negative-index quirks.
    c_t = jnp.cumsum(target.reshape(3, -1), axis=1).astype(jnp.int32).reshape(-1)
    c_o = jnp.cumsum(output.reshape(3, -1), axis=1).astype(jnp.int32).reshape(-1)

    loss = pl.pallas_call(
        functools.partial(_l2loss_kernel, L=L),
        out_shape=jax.ShapeDtypeStruct((1, 1), jnp.float32),
        in_specs=[
            pl.BlockSpec(memory_space=pltpu.MemorySpace.SMEM),   # c_t (3*L,)
            pl.BlockSpec(memory_space=pltpu.MemorySpace.SMEM),   # c_o (3*L,)
        ],
        out_specs=pl.BlockSpec(memory_space=pltpu.MemorySpace.SMEM),
    )(c_t, c_o)
    return loss[0, 0]


def _ref_l2loss(target, output):
    """Direct numpy transcription of the PyTorch module's forward."""
    t = np.asarray(target, dtype=np.float32).copy()
    o = np.asarray(output, dtype=np.float32).copy()
    h1 = np.zeros(HIST_LEN)
    h2 = np.zeros(HIST_LEN)
    loss = 0.0
    for i in range(3):
        t[i, :, 0] = np.cumsum(t[i])
        o[i, :, 0] = np.cumsum(o[i])
        L = len(t[i])
        for j in range(L):
            if j == 0:
                h1[:int(t[i, j, 0])] = 0
                h2[:int(o[i, j, 0])] = 0
            elif j == L - 1:
                h1[int(t[i, j, 0]):] = j
                h2[int(o[i, j, 0]):] = j
            else:
                h1[int(t[i, j - 1, 0]):int(t[i, j, 0])] = j
                h2[int(o[i, j - 1, 0]):int(o[i, j, 0])] = j
        loss += np.sqrt(np.sum(np.square(np.absolute(h1 - h2))))
    return loss


if __name__ == "__main__":
    # TODO(synk): the original forward's `print('loss:', ...)` side effect,
    # the in-place mutation of the input arrays, and the histogram state
    # carried across forward() calls are intentionally not reproduced.
    key = jax.random.PRNGKey(0)
    k1, k2 = jax.random.split(key)
    L = 8
    # Positive step sizes so cumsum boundaries are increasing and < 224*224.
    target = jax.random.uniform(k1, (3, L, 1), jnp.float32, 100.0, 2000.0)
    output = jax.random.uniform(k2, (3, L, 1), jnp.float32, 100.0, 2000.0)

    loss = jax.block_until_ready(l2loss(target, output))

    ref = _ref_l2loss(np.asarray(target), np.asarray(output))
    assert np.allclose(float(loss), ref, rtol=1e-5, atol=1e-3), (float(loss), ref)
    print("KERNEL_OK")
</pallas_src>

<mosaic_0001>
module attributes {stable_mosaic.version = 11 : i64} {
  func.func @_l2loss_kernel(%arg0: memref<24xi32, #tpu.memory_space<smem>>, %arg1: memref<24xi32, #tpu.memory_space<smem>>, %arg2: memref<1x1xf32, #tpu.memory_space<smem>>) attributes {dimension_semantics = [], scalar_prefetch = 0 : i64, scratch_operands = 0 : i64, tpu.core_type = #tpu.core_type<tc>} {
    %0 = tpu.iota {dimensions = array<i32: 0>} : vector<56x128xi32>
    %c128_i32 = arith.constant 128 : i32
    %1 = vector.broadcast %c128_i32 : i32 to vector<56x128xi32>
    %2 = arith.muli %0, %1 : vector<56x128xi32>
    %3 = tpu.iota {dimensions = array<i32: 1>} : vector<56x128xi32>
    %4 = arith.addi %2, %3 : vector<56x128xi32>
    %c0 = arith.constant 0 : index
    %5 = memref.load %arg0[%c0] : memref<24xi32, #tpu.memory_space<smem>>
    %c1 = arith.constant 1 : index
    %6 = memref.load %arg0[%c1] : memref<24xi32, #tpu.memory_space<smem>>
    %c2 = arith.constant 2 : index
    %7 = memref.load %arg0[%c2] : memref<24xi32, #tpu.memory_space<smem>>
    %c3 = arith.constant 3 : index
    %8 = memref.load %arg0[%c3] : memref<24xi32, #tpu.memory_space<smem>>
    %c4 = arith.constant 4 : index
    %9 = memref.load %arg0[%c4] : memref<24xi32, #tpu.memory_space<smem>>
    %c5 = arith.constant 5 : index
    %10 = memref.load %arg0[%c5] : memref<24xi32, #tpu.memory_space<smem>>
    %c6 = arith.constant 6 : index
    %11 = memref.load %arg0[%c6] : memref<24xi32, #tpu.memory_space<smem>>
    %c7 = arith.constant 7 : index
    %12 = memref.load %arg0[%c7] : memref<24xi32, #tpu.memory_space<smem>>
    %c8 = arith.constant 8 : index
    %13 = memref.load %arg0[%c8] : memref<24xi32, #tpu.memory_space<smem>>
    %c9 = arith.constant 9 : index
    %14 = memref.load %arg0[%c9] : memref<24xi32, #tpu.memory_space<smem>>
    %c10 = arith.constant 10 : index
    %15 = memref.load %arg0[%c10] : memref<24xi32, #tpu.memory_space<smem>>
    %c11 = arith.constant 11 : index
    %16 = memref.load %arg0[%c11] : memref<24xi32, #tpu.memory_space<smem>>
    %c12 = arith.constant 12 : index
    %17 = memref.load %arg0[%c12] : memref<24xi32, #tpu.memory_space<smem>>
    %c13 = arith.constant 13 : index
    %18 = memref.load %arg0[%c13] : memref<24xi32, #tpu.memory_space<smem>>
    %c14 = arith.constant 14 : index
    %19 = memref.load %arg0[%c14] : memref<24xi32, #tpu.memory_space<smem>>
    %c15 = arith.constant 15 : index
    %20 = memref.load %arg0[%c15] : memref<24xi32, #tpu.memory_space<smem>>
    %c16 = arith.constant 16 : index
    %21 = memref.load %arg0[%c16] : memref<24xi32, #tpu.memory_space<smem>>
    %c17 = arith.constant 17 : index
    %22 = memref.load %arg0[%c17] : memref<24xi32, #tpu.memory_space<smem>>
    %c18 = arith.constant 18 : index
    %23 = memref.load %arg0[%c18] : memref<24xi32, #tpu.memory_space<smem>>
    %c19 = arith.constant 19 : index
    %24 = memref.load %arg0[%c19] : memref<24xi32, #tpu.memory_space<smem>>
    %c20 = arith.constant 20 : index
    %25 = memref.load %arg0[%c20] : memref<24xi32, #tpu.memory_space<smem>>
    %c21 = arith.constant 21 : index
    %26 = memref.load %arg0[%c21] : memref<24xi32, #tpu.memory_space<smem>>
    %c22 = arith.constant 22 : index
    %27 = memref.load %arg0[%c22] : memref<24xi32, #tpu.memory_space<smem>>
    %c23 = arith.constant 23 : index
    %28 = memref.load %arg0[%c23] : memref<24xi32, #tpu.memory_space<smem>>
    %c0_0 = arith.constant 0 : index
    %29 = memref.load %arg1[%c0_0] : memref<24xi32, #tpu.memory_space<smem>>
    %c1_1 = arith.constant 1 : index
    %30 = memref.load %arg1[%c1_1] : memref<24xi32, #tpu.memory_space<smem>>
    %c2_2 = arith.constant 2 : index
    %31 = memref.load %arg1[%c2_2] : memref<24xi32, #tpu.memory_space<smem>>
    %c3_3 = arith.constant 3 : index
    %32 = memref.load %arg1[%c3_3] : memref<24xi32, #tpu.memory_space<smem>>
    %c4_4 = arith.constant 4 : index
    %33 = memref.load %arg1[%c4_4] : memref<24xi32, #tpu.memory_space<smem>>
    %c5_5 = arith.constant 5 : index
    %34 = memref.load %arg1[%c5_5] : memref<24xi32, #tpu.memory_space<smem>>
    %c6_6 = arith.constant 6 : index
    %35 = memref.load %arg1[%c6_6] : memref<24xi32, #tpu.memory_space<smem>>
    %c7_7 = arith.constant 7 : index
    %36 = memref.load %arg1[%c7_7] : memref<24xi32, #tpu.memory_space<smem>>
    %c8_8 = arith.constant 8 : index
    %37 = memref.load %arg1[%c8_8] : memref<24xi32, #tpu.memory_space<smem>>
    %c9_9 = arith.constant 9 : index
    %38 = memref.load %arg1[%c9_9] : memref<24xi32, #tpu.memory_space<smem>>
    %c10_10 = arith.constant 10 : index
    %39 = memref.load %arg1[%c10_10] : memref<24xi32, #tpu.memory_space<smem>>
    %c11_11 = arith.constant 11 : index
    %40 = memref.load %arg1[%c11_11] : memref<24xi32, #tpu.memory_space<smem>>
    %c12_12 = arith.constant 12 : index
    %41 = memref.load %arg1[%c12_12] : memref<24xi32, #tpu.memory_space<smem>>
    %c13_13 = arith.constant 13 : index
    %42 = memref.load %arg1[%c13_13] : memref<24xi32, #tpu.memory_space<smem>>
    %c14_14 = arith.constant 14 : index
    %43 = memref.load %arg1[%c14_14] : memref<24xi32, #tpu.memory_space<smem>>
    %c15_15 = arith.constant 15 : index
    %44 = memref.load %arg1[%c15_15] : memref<24xi32, #tpu.memory_space<smem>>
    %c16_16 = arith.constant 16 : index
    %45 = memref.load %arg1[%c16_16] : memref<24xi32, #tpu.memory_space<smem>>
    %c17_17 = arith.constant 17 : index
    %46 = memref.load %arg1[%c17_17] : memref<24xi32, #tpu.memory_space<smem>>
    %c18_18 = arith.constant 18 : index
    %47 = memref.load %arg1[%c18_18] : memref<24xi32, #tpu.memory_space<smem>>
    %c19_19 = arith.constant 19 : index
    %48 = memref.load %arg1[%c19_19] : memref<24xi32, #tpu.memory_space<smem>>
    %c20_20 = arith.constant 20 : index
    %49 = memref.load %arg1[%c20_20] : memref<24xi32, #tpu.memory_space<smem>>
    %c21_21 = arith.constant 21 : index
    %50 = memref.load %arg1[%c21_21] : memref<24xi32, #tpu.memory_space<smem>>
    %c22_22 = arith.constant 22 : index
    %51 = memref.load %arg1[%c22_22] : memref<24xi32, #tpu.memory_space<smem>>
    %c23_23 = arith.constant 23 : index
    %52 = memref.load %arg1[%c23_23] : memref<24xi32, #tpu.memory_space<smem>>
    %cst = arith.constant 0.000000e+00 : f32
    %53 = vector.broadcast %cst : f32 to vector<8x128xf32>
    %c0_i32 = arith.constant 0 : i32
    %c7_i32 = arith.constant 7 : i32
    %54 = arith.addi %c0_i32, %c7_i32 : i32
    %c1_i32 = arith.constant 1 : i32
    %55:3 = scf.for %arg3 = %c0_i32 to %54 step %c1_i32 iter_args(%arg4 = %53, %arg5 = %53, %arg6 = %53) -> (vector<8x128xf32>, vector<8x128xf32>, vector<8x128xf32>)  : i32 {
      %c7168_i32 = arith.constant 7168 : i32
      %71 = arith.muli %arg3, %c7168_i32 : i32
      %72 = vector.broadcast %71 : i32 to vector<56x128xi32>
      %73 = arith.addi %4, %72 : vector<56x128xi32>
      %cst_32 = arith.constant 0.000000e+00 : f32
      %74 = vector.broadcast %cst_32 : f32 to vector<56x128xf32>
      %cst_33 = arith.constant 0.000000e+00 : f32
      %75 = vector.broadcast %cst_33 : f32 to vector<56x128xf32>
      %cst_34 = arith.constant 0.000000e+00 : f32
      %76 = vector.broadcast %cst_34 : f32 to vector<56x128xf32>
      %77 = vector.broadcast %5 : i32 to vector<56x128xi32>
      %78 = arith.cmpi sge, %73, %77 : vector<56x128xi32>
      %79 = arith.extui %78 : vector<56x128xi1> to vector<56x128xi32>
      %80 = arith.sitofp %79 : vector<56x128xi32> to vector<56x128xf32>
      %81 = arith.addf %76, %80 : vector<56x128xf32>
      %82 = vector.broadcast %6 : i32 to vector<56x128xi32>
      %83 = arith.cmpi sge, %73, %82 : vector<56x128xi32>
      %84 = arith.extui %83 : vector<56x128xi1> to vector<56x128xi32>
      %85 = arith.sitofp %84 : vector<56x128xi32> to vector<56x128xf32>
      %86 = arith.addf %81, %85 : vector<56x128xf32>
      %87 = vector.broadcast %7 : i32 to vector<56x128xi32>
      %88 = arith.cmpi sge, %73, %87 : vector<56x128xi32>
      %89 = arith.extui %88 : vector<56x128xi1> to vector<56x128xi32>
      %90 = arith.sitofp %89 : vector<56x128xi32> to vector<56x128xf32>
      %91 = arith.addf %86, %90 : vector<56x128xf32>
      %92 = vector.broadcast %8 : i32 to vector<56x128xi32>
      %93 = arith.cmpi sge, %73, %92 : vector<56x128xi32>
      %94 = arith.extui %93 : vector<56x128xi1> to vector<56x128xi32>
      %95 = arith.sitofp %94 : vector<56x128xi32> to vector<56x128xf32>
      %96 = arith.addf %91, %95 : vector<56x128xf32>
      %97 = vector.broadcast %9 : i32 to vector<56x128xi32>
      %98 = arith.cmpi sge, %73, %97 : vector<56x128xi32>
      %99 = arith.extui %98 : vector<56x128xi1> to vector<56x128xi32>
      %100 = arith.sitofp %99 : vector<56x128xi32> to vector<56x128xf32>
      %101 = arith.addf %96, %100 : vector<56x128xf32>
      %102 = vector.broadcast %10 : i32 to vector<56x128xi32>
      %103 = arith.cmpi sge, %73, %102 : vector<56x128xi32>
      %104 = arith.extui %103 : vector<56x128xi1> to vector<56x128xi32>
      %105 = arith.sitofp %104 : vector<56x128xi32> to vector<56x128xf32>
      %106 = arith.addf %101, %105 : vector<56x128xf32>
      %107 = vector.broadcast %11 : i32 to vector<56x128xi32>
      %108 = arith.cmpi sge, %73, %107 : vector<56x128xi32>
      %109 = arith.extui %108 : vector<56x128xi1> to vector<56x128xi32>
      %110 = arith.sitofp %109 : vector<56x128xi32> to vector<56x128xf32>
      %111 = arith.addf %106, %110 : vector<56x128xf32>
      %112 = vector.broadcast %12 : i32 to vector<56x128xi32>
      %113 = arith.cmpi slt, %73, %112 : vector<56x128xi32>
      %114 = arith.andi %108, %113 : vector<56x128xi1>
      %115 = arith.select %114, %74, %111 : vector<56x128xi1>, vector<56x128xf32>
      %cst_35 = arith.constant 0.000000e+00 : f32
      %116 = vector.broadcast %cst_35 : f32 to vector<56x128xf32>
      %117 = vector.broadcast %29 : i32 to vector<56x128xi32>
      %118 = arith.cmpi sge, %73, %117 : vector<56x128xi32>
      %119 = arith.extui %118 : vector<56x128xi1> to vector<56x128xi32>
      %120 = arith.sitofp %119 : vector<56x128xi32> to vector<56x128xf32>
      %121 = arith.addf %116, %120 : vector<56x128xf32>
      %122 = vector.broadcast %30 : i32 to vector<56x128xi32>
      %123 = arith.cmpi sge, %73, %122 : vector<56x128xi32>
      %124 = arith.extui %123 : vector<56x128xi1> to vector<56x128xi32>
      %125 = arith.sitofp %124 : vector<56x128xi32> to vector<56x128xf32>
      %126 = arith.addf %121, %125 : vector<56x128xf32>
      %127 = vector.broadcast %31 : i32 to vector<56x128xi32>
      %128 = arith.cmpi sge, %73, %127 : vector<56x128xi32>
      %129 = arith.extui %128 : vector<56x128xi1> to vector<56x128xi32>
      %130 = arith.sitofp %129 : vector<56x128xi32> to vector<56x128xf32>
      %131 = arith.addf %126, %130 : vector<56x128xf32>
      %132 = vector.broadcast %32 : i32 to vector<56x128xi32>
      %133 = arith.cmpi sge, %73, %132 : vector<56x128xi32>
      %134 = arith.extui %133 : vector<56x128xi1> to vector<56x128xi32>
      %135 = arith.sitofp %134 : vector<56x128xi32> to vector<56x128xf32>
      %136 = arith.addf %131, %135 : vector<56x128xf32>
      %137 = vector.broadcast %33 : i32 to vector<56x128xi32>
      %138 = arith.cmpi sge, %73, %137 : vector<56x128xi32>
      %139 = arith.extui %138 : vector<56x128xi1> to vector<56x128xi32>
      %140 = arith.sitofp %139 : vector<56x128xi32> to vector<56x128xf32>
      %141 = arith.addf %136, %140 : vector<56x128xf32>
      %142 = vector.broadcast %34 : i32 to vector<56x128xi32>
      %143 = arith.cmpi sge, %73, %142 : vector<56x128xi32>
      %144 = arith.extui %143 : vector<56x128xi1> to vector<56x128xi32>
      %145 = arith.sitofp %144 : vector<56x128xi32> to vector<56x128xf32>
      %146 = arith.addf %141, %145 : vector<56x128xf32>
      %147 = vector.broadcast %35 : i32 to vector<56x128xi32>
      %148 = arith.cmpi sge, %73, %147 : vector<56x128xi32>
      %149 = arith.extui %148 : vector<56x128xi1> to vector<56x128xi32>
      %150 = arith.sitofp %149 : vector<56x128xi32> to vector<56x128xf32>
      %151 = arith.addf %146, %150 : vector<56x128xf32>
      %152 = vector.broadcast %36 : i32 to vector<56x128xi32>
      %153 = arith.cmpi slt, %73, %152 : vector<56x128xi32>
      %154 = arith.andi %148, %153 : vector<56x128xi1>
      %155 = arith.select %154, %75, %151 : vector<56x128xi1>, vector<56x128xf32>
      %156 = arith.subf %115, %155 : vector<56x128xf32>
      %157 = arith.mulf %156, %156 : vector<56x128xf32>
      %158 = vector.extract_strided_slice %157 {offsets = [0, 0], sizes = [8, 128], strides = [1, 1]} : vector<56x128xf32> to vector<8x128xf32>
      %159 = vector.extract_strided_slice %157 {offsets = [8, 0], sizes = [8, 128], strides = [1, 1]} : vector<56x128xf32> to vector<8x128xf32>
      %160 = arith.addf %158, %159 : vector<8x128xf32>
      %161 = vector.extract_strided_slice %157 {offsets = [16, 0], sizes = [8, 128], strides = [1, 1]} : vector<56x128xf32> to vector<8x128xf32>
      %162 = arith.addf %160, %161 : vector<8x128xf32>
      %163 = vector.extract_strided_slice %157 {offsets = [24, 0], sizes = [8, 128], strides = [1, 1]} : vector<56x128xf32> to vector<8x128xf32>
      %164 = arith.addf %162, %163 : vector<8x128xf32>
      %165 = vector.extract_strided_slice %157 {offsets = [32, 0], sizes = [8, 128], strides = [1, 1]} : vector<56x128xf32> to vector<8x128xf32>
      %166 = arith.addf %164, %165 : vector<8x128xf32>
      %167 = vector.extract_strided_slice %157 {offsets = [40, 0], sizes = [8, 128], strides = [1, 1]} : vector<56x128xf32> to vector<8x128xf32>
      %168 = arith.addf %166, %167 : vector<8x128xf32>
      %169 = vector.extract_strided_slice %157 {offsets = [48, 0], sizes = [8, 128], strides = [1, 1]} : vector<56x128xf32> to vector<8x128xf32>
      %170 = arith.addf %168, %169 : vector<8x128xf32>
      %171 = arith.addf %arg4, %170 : vector<8x128xf32>
      %cst_36 = arith.constant 0.000000e+00 : f32
      %172 = vector.broadcast %cst_36 : f32 to vector<56x128xf32>
      %173 = vector.broadcast %13 : i32 to vector<56x128xi32>
      %174 = arith.cmpi sge, %73, %173 : vector<56x128xi32>
      %175 = arith.extui %174 : vector<56x128xi1> to vector<56x128xi32>
      %176 = arith.sitofp %175 : vector<56x128xi32> to vector<56x128xf32>
      %177 = arith.addf %172, %176 : vector<56x128xf32>
      %178 = vector.broadcast %14 : i32 to vector<56x128xi32>
      %179 = arith.cmpi sge, %73, %178 : vector<56x128xi32>
      %180 = arith.extui %179 : vector<56x128xi1> to vector<56x128xi32>
      %181 = arith.sitofp %180 : vector<56x128xi32> to vector<56x128xf32>
      %182 = arith.addf %177, %181 : vector<56x128xf32>
      %183 = vector.broadcast %15 : i32 to vector<56x128xi32>
      %184 = arith.cmpi sge, %73, %183 : vector<56x128xi32>
      %185 = arith.extui %184 : vector<56x128xi1> to vector<56x128xi32>
      %186 = arith.sitofp %185 : vector<56x128xi32> to vector<56x128xf32>
      %187 = arith.addf %182, %186 : vector<56x128xf32>
      %188 = vector.broadcast %16 : i32 to vector<56x128xi32>
      %189 = arith.cmpi sge, %73, %188 : vector<56x128xi32>
      %190 = arith.extui %189 : vector<56x128xi1> to vector<56x128xi32>
      %191 = arith.sitofp %190 : vector<56x128xi32> to vector<56x128xf32>
      %192 = arith.addf %187, %191 : vector<56x128xf32>
      %193 = vector.broadcast %17 : i32 to vector<56x128xi32>
      %194 = arith.cmpi sge, %73, %193 : vector<56x128xi32>
      %195 = arith.extui %194 : vector<56x128xi1> to vector<56x128xi32>
      %196 = arith.sitofp %195 : vector<56x128xi32> to vector<56x128xf32>
      %197 = arith.addf %192, %196 : vector<56x128xf32>
      %198 = vector.broadcast %18 : i32 to vector<56x128xi32>
      %199 = arith.cmpi sge, %73, %198 : vector<56x128xi32>
      %200 = arith.extui %199 : vector<56x128xi1> to vector<56x128xi32>
      %201 = arith.sitofp %200 : vector<56x128xi32> to vector<56x128xf32>
      %202 = arith.addf %197, %201 : vector<56x128xf32>
      %203 = vector.broadcast %19 : i32 to vector<56x128xi32>
      %204 = arith.cmpi sge, %73, %203 : vector<56x128xi32>
      %205 = arith.extui %204 : vector<56x128xi1> to vector<56x128xi32>
      %206 = arith.sitofp %205 : vector<56x128xi32> to vector<56x128xf32>
      %207 = arith.addf %202, %206 : vector<56x128xf32>
      %208 = vector.broadcast %20 : i32 to vector<56x128xi32>
      %209 = arith.cmpi slt, %73, %208 : vector<56x128xi32>
      %210 = arith.andi %204, %209 : vector<56x128xi1>
      %211 = arith.select %210, %115, %207 : vector<56x128xi1>, vector<56x128xf32>
      %cst_37 = arith.constant 0.000000e+00 : f32
      %212 = vector.broadcast %cst_37 : f32 to vector<56x128xf32>
      %213 = vector.broadcast %37 : i32 to vector<56x128xi32>
      %214 = arith.cmpi sge, %73, %213 : vector<56x128xi32>
      %215 = arith.extui %214 : vector<56x128xi1> to vector<56x128xi32>
      %216 = arith.sitofp %215 : vector<56x128xi32> to vector<56x128xf32>
      %217 = arith.addf %212, %216 : vector<56x128xf32>
      %218 = vector.broadcast %38 : i32 to vector<56x128xi32>
      %219 = arith.cmpi sge, %73, %218 : vector<56x128xi32>
      %220 = arith.extui %219 : vector<56x128xi1> to vector<56x128xi32>
      %221 = arith.sitofp %220 : vector<56x128xi32> to vector<56x128xf32>
      %222 = arith.addf %217, %221 : vector<56x128xf32>
      %223 = vector.broadcast %39 : i32 to vector<56x128xi32>
      %224 = arith.cmpi sge, %73, %223 : vector<56x128xi32>
      %225 = arith.extui %224 : vector<56x128xi1> to vector<56x128xi32>
      %226 = arith.sitofp %225 : vector<56x128xi32> to vector<56x128xf32>
      %227 = arith.addf %222, %226 : vector<56x128xf32>
      %228 = vector.broadcast %40 : i32 to vector<56x128xi32>
      %229 = arith.cmpi sge, %73, %228 : vector<56x128xi32>
      %230 = arith.extui %229 : vector<56x128xi1> to vector<56x128xi32>
      %231 = arith.sitofp %230 : vector<56x128xi32> to vector<56x128xf32>
      %232 = arith.addf %227, %231 : vector<56x128xf32>
      %233 = vector.broadcast %41 : i32 to vector<56x128xi32>
      %234 = arith.cmpi sge, %73, %233 : vector<56x128xi32>
      %235 = arith.extui %234 : vector<56x128xi1> to vector<56x128xi32>
      %236 = arith.sitofp %235 : vector<56x128xi32> to vector<56x128xf32>
      %237 = arith.addf %232, %236 : vector<56x128xf32>
      %238 = vector.broadcast %42 : i32 to vector<56x128xi32>
      %239 = arith.cmpi sge, %73, %238 : vector<56x128xi32>
      %240 = arith.extui %239 : vector<56x128xi1> to vector<56x128xi32>
      %241 = arith.sitofp %240 : vector<56x128xi32> to vector<56x128xf32>
      %242 = arith.addf %237, %241 : vector<56x128xf32>
      %243 = vector.broadcast %43 : i32 to vector<56x128xi32>
      %244 = arith.cmpi sge, %73, %243 : vector<56x128xi32>
      %245 = arith.extui %244 : vector<56x128xi1> to vector<56x128xi32>
      %246 = arith.sitofp %245 : vector<56x128xi32> to vector<56x128xf32>
      %247 = arith.addf %242, %246 : vector<56x128xf32>
      %248 = vector.broadcast %44 : i32 to vector<56x128xi32>
      %249 = arith.cmpi slt, %73, %248 : vector<56x128xi32>
      %250 = arith.andi %244, %249 : vector<56x128xi1>
      %251 = arith.select %250, %155, %247 : vector<56x128xi1>, vector<56x128xf32>
      %252 = arith.subf %211, %251 : vector<56x128xf32>
      %253 = arith.mulf %252, %252 : vector<56x128xf32>
      %254 = vector.extract_strided_slice %253 {offsets = [0, 0], sizes = [8, 128], strides = [1, 1]} : vector<56x128xf32> to vector<8x128xf32>
      %255 = vector.extract_strided_slice %253 {offsets = [8, 0], sizes = [8, 128], strides = [1, 1]} : vector<56x128xf32> to vector<8x128xf32>
      %256 = arith.addf %254, %255 : vector<8x128xf32>
      %257 = vector.extract_strided_slice %253 {offsets = [16, 0], sizes = [8, 128], strides = [1, 1]} : vector<56x128xf32> to vector<8x128xf32>
      %258 = arith.addf %256, %257 : vector<8x128xf32>
      %259 = vector.extract_strided_slice %253 {offsets = [24, 0], sizes = [8, 128], strides = [1, 1]} : vector<56x128xf32> to vector<8x128xf32>
      %260 = arith.addf %258, %259 : vector<8x128xf32>
      %261 = vector.extract_strided_slice %253 {offsets = [32, 0], sizes = [8, 128], strides = [1, 1]} : vector<56x128xf32> to vector<8x128xf32>
      %262 = arith.addf %260, %261 : vector<8x128xf32>
      %263 = vector.extract_strided_slice %253 {offsets = [40, 0], sizes = [8, 128], strides = [1, 1]} : vector<56x128xf32> to vector<8x128xf32>
      %264 = arith.addf %262, %263 : vector<8x128xf32>
      %265 = vector.extract_strided_slice %253 {offsets = [48, 0], sizes = [8, 128], strides = [1, 1]} : vector<56x128xf32> to vector<8x128xf32>
      %266 = arith.addf %264, %265 : vector<8x128xf32>
      %267 = arith.addf %arg5, %266 : vector<8x128xf32>
      %cst_38 = arith.constant 0.000000e+00 : f32
      %268 = vector.broadcast %cst_38 : f32 to vector<56x128xf32>
      %269 = vector.broadcast %21 : i32 to vector<56x128xi32>
      %270 = arith.cmpi sge, %73, %269 : vector<56x128xi32>
      %271 = arith.extui %270 : vector<56x128xi1> to vector<56x128xi32>
      %272 = arith.sitofp %271 : vector<56x128xi32> to vector<56x128xf32>
      %273 = arith.addf %268, %272 : vector<56x128xf32>
      %274 = vector.broadcast %22 : i32 to vector<56x128xi32>
      %275 = arith.cmpi sge, %73, %274 : vector<56x128xi32>
      %276 = arith.extui %275 : vector<56x128xi1> to vector<56x128xi32>
      %277 = arith.sitofp %276 : vector<56x128xi32> to vector<56x128xf32>
      %278 = arith.addf %273, %277 : vector<56x128xf32>
      %279 = vector.broadcast %23 : i32 to vector<56x128xi32>
      %280 = arith.cmpi sge, %73, %279 : vector<56x128xi32>
      %281 = arith.extui %280 : vector<56x128xi1> to vector<56x128xi32>
      %282 = arith.sitofp %281 : vector<56x128xi32> to vector<56x128xf32>
      %283 = arith.addf %278, %282 : vector<56x128xf32>
      %284 = vector.broadcast %24 : i32 to vector<56x128xi32>
      %285 = arith.cmpi sge, %73, %284 : vector<56x128xi32>
      %286 = arith.extui %285 : vector<56x128xi1> to vector<56x128xi32>
      %287 = arith.sitofp %286 : vector<56x128xi32> to vector<56x128xf32>
      %288 = arith.addf %283, %287 : vector<56x128xf32>
      %289 = vector.broadcast %25 : i32 to vector<56x128xi32>
      %290 = arith.cmpi sge, %73, %289 : vector<56x128xi32>
      %291 = arith.extui %290 : vector<56x128xi1> to vector<56x128xi32>
      %292 = arith.sitofp %291 : vector<56x128xi32> to vector<56x128xf32>
      %293 = arith.addf %288, %292 : vector<56x128xf32>
      %294 = vector.broadcast %26 : i32 to vector<56x128xi32>
      %295 = arith.cmpi sge, %73, %294 : vector<56x128xi32>
      %296 = arith.extui %295 : vector<56x128xi1> to vector<56x128xi32>
      %297 = arith.sitofp %296 : vector<56x128xi32> to vector<56x128xf32>
      %298 = arith.addf %293, %297 : vector<56x128xf32>
      %299 = vector.broadcast %27 : i32 to vector<56x128xi32>
      %300 = arith.cmpi sge, %73, %299 : vector<56x128xi32>
      %301 = arith.extui %300 : vector<56x128xi1> to vector<56x128xi32>
      %302 = arith.sitofp %301 : vector<56x128xi32> to vector<56x128xf32>
      %303 = arith.addf %298, %302 : vector<56x128xf32>
      %304 = vector.broadcast %28 : i32 to vector<56x128xi32>
      %305 = arith.cmpi slt, %73, %304 : vector<56x128xi32>
      %306 = arith.andi %300, %305 : vector<56x128xi1>
      %307 = arith.select %306, %211, %303 : vector<56x128xi1>, vector<56x128xf32>
      %cst_39 = arith.constant 0.000000e+00 : f32
      %308 = vector.broadcast %cst_39 : f32 to vector<56x128xf32>
      %309 = vector.broadcast %45 : i32 to vector<56x128xi32>
      %310 = arith.cmpi sge, %73, %309 : vector<56x128xi32>
      %311 = arith.extui %310 : vector<56x128xi1> to vector<56x128xi32>
      %312 = arith.sitofp %311 : vector<56x128xi32> to vector<56x128xf32>
      %313 = arith.addf %308, %312 : vector<56x128xf32>
      %314 = vector.broadcast %46 : i32 to vector<56x128xi32>
      %315 = arith.cmpi sge, %73, %314 : vector<56x128xi32>
      %316 = arith.extui %315 : vector<56x128xi1> to vector<56x128xi32>
      %317 = arith.sitofp %316 : vector<56x128xi32> to vector<56x128xf32>
      %318 = arith.addf %313, %317 : vector<56x128xf32>
      %319 = vector.broadcast %47 : i32 to vector<56x128xi32>
      %320 = arith.cmpi sge, %73, %319 : vector<56x128xi32>
      %321 = arith.extui %320 : vector<56x128xi1> to vector<56x128xi32>
      %322 = arith.sitofp %321 : vector<56x128xi32> to vector<56x128xf32>
      %323 = arith.addf %318, %322 : vector<56x128xf32>
      %324 = vector.broadcast %48 : i32 to vector<56x128xi32>
      %325 = arith.cmpi sge, %73, %324 : vector<56x128xi32>
      %326 = arith.extui %325 : vector<56x128xi1> to vector<56x128xi32>
      %327 = arith.sitofp %326 : vector<56x128xi32> to vector<56x128xf32>
      %328 = arith.addf %323, %327 : vector<56x128xf32>
      %329 = vector.broadcast %49 : i32 to vector<56x128xi32>
      %330 = arith.cmpi sge, %73, %329 : vector<56x128xi32>
      %331 = arith.extui %330 : vector<56x128xi1> to vector<56x128xi32>
      %332 = arith.sitofp %331 : vector<56x128xi32> to vector<56x128xf32>
      %333 = arith.addf %328, %332 : vector<56x128xf32>
      %334 = vector.broadcast %50 : i32 to vector<56x128xi32>
      %335 = arith.cmpi sge, %73, %334 : vector<56x128xi32>
      %336 = arith.extui %335 : vector<56x128xi1> to vector<56x128xi32>
      %337 = arith.sitofp %336 : vector<56x128xi32> to vector<56x128xf32>
      %338 = arith.addf %333, %337 : vector<56x128xf32>
      %339 = vector.broadcast %51 : i32 to vector<56x128xi32>
      %340 = arith.cmpi sge, %73, %339 : vector<56x128xi32>
      %341 = arith.extui %340 : vector<56x128xi1> to vector<56x128xi32>
      %342 = arith.sitofp %341 : vector<56x128xi32> to vector<56x128xf32>
      %343 = arith.addf %338, %342 : vector<56x128xf32>
      %344 = vector.broadcast %52 : i32 to vector<56x128xi32>
      %345 = arith.cmpi slt, %73, %344 : vector<56x128xi32>
      %346 = arith.andi %340, %345 : vector<56x128xi1>
      %347 = arith.select %346, %251, %343 : vector<56x128xi1>, vector<56x128xf32>
      %348 = arith.subf %307, %347 : vector<56x128xf32>
      %349 = arith.mulf %348, %348 : vector<56x128xf32>
      %350 = vector.extract_strided_slice %349 {offsets = [0, 0], sizes = [8, 128], strides = [1, 1]} : vector<56x128xf32> to vector<8x128xf32>
      %351 = vector.extract_strided_slice %349 {offsets = [8, 0], sizes = [8, 128], strides = [1, 1]} : vector<56x128xf32> to vector<8x128xf32>
      %352 = arith.addf %350, %351 : vector<8x128xf32>
      %353 = vector.extract_strided_slice %349 {offsets = [16, 0], sizes = [8, 128], strides = [1, 1]} : vector<56x128xf32> to vector<8x128xf32>
      %354 = arith.addf %352, %353 : vector<8x128xf32>
      %355 = vector.extract_strided_slice %349 {offsets = [24, 0], sizes = [8, 128], strides = [1, 1]} : vector<56x128xf32> to vector<8x128xf32>
      %356 = arith.addf %354, %355 : vector<8x128xf32>
      %357 = vector.extract_strided_slice %349 {offsets = [32, 0], sizes = [8, 128], strides = [1, 1]} : vector<56x128xf32> to vector<8x128xf32>
      %358 = arith.addf %356, %357 : vector<8x128xf32>
      %359 = vector.extract_strided_slice %349 {offsets = [40, 0], sizes = [8, 128], strides = [1, 1]} : vector<56x128xf32> to vector<8x128xf32>
      %360 = arith.addf %358, %359 : vector<8x128xf32>
      %361 = vector.extract_strided_slice %349 {offsets = [48, 0], sizes = [8, 128], strides = [1, 1]} : vector<56x128xf32> to vector<8x128xf32>
      %362 = arith.addf %360, %361 : vector<8x128xf32>
      %363 = arith.addf %arg6, %362 : vector<8x128xf32>
      scf.yield %171, %267, %363 : vector<8x128xf32>, vector<8x128xf32>, vector<8x128xf32>
    }
    %c7_i32_24 = arith.constant 7 : i32
    %cst_25 = arith.constant dense<0.000000e+00> : vector<128xf32>
    %56 = vector.multi_reduction <add>, %55#0, %cst_25 [0] : vector<8x128xf32> to vector<128xf32>
    %57 = vector.shape_cast %56 : vector<128xf32> to vector<1x128xf32>
    %cst_26 = arith.constant dense<0.000000e+00> : vector<128xf32>
    %58 = vector.multi_reduction <add>, %55#1, %cst_26 [0] : vector<8x128xf32> to vector<128xf32>
    %59 = vector.shape_cast %58 : vector<128xf32> to vector<1x128xf32>
    %cst_27 = arith.constant dense<0.000000e+00> : vector<128xf32>
    %60 = vector.multi_reduction <add>, %55#2, %cst_27 [0] : vector<8x128xf32> to vector<128xf32>
    %61 = vector.shape_cast %60 : vector<128xf32> to vector<1x128xf32>
    %62 = tpu.concatenate %57, %59, %61 in 0 : vector<1x128xf32>, vector<1x128xf32>, vector<1x128xf32> -> vector<3x128xf32>
    %cst_28 = arith.constant dense<0.000000e+00> : vector<3xf32>
    %63 = vector.multi_reduction <add>, %62, %cst_28 [1] : vector<3x128xf32> to vector<3xf32>
    %64 = vector.shape_cast %63 : vector<3xf32> to vector<3x1xf32>
    %65 = math.sqrt %64 : vector<3x1xf32>
    %66 = vector.shape_cast %65 : vector<3x1xf32> to vector<1x3x1xf32>
    %cst_29 = arith.constant dense<0.000000e+00> : vector<1xf32>
    %67 = vector.multi_reduction <add>, %66, %cst_29 [1, 2] : vector<1x3x1xf32> to vector<1xf32>
    %68 = vector.shape_cast %67 : vector<1xf32> to vector<1x1x1xf32>
    %69 = vector.extract %68[0, 0, 0] : f32 from vector<1x1x1xf32>
    %c0_30 = arith.constant 0 : index
    %c0_31 = arith.constant 0 : index
    %70 = memref.load %arg2[%c0_30, %c0_31] : memref<1x1xf32, #tpu.memory_space<smem>>
    memref.store %69, %arg2[%c0_30, %c0_31] : memref<1x1xf32, #tpu.memory_space<smem>>
    return
  }
}

</mosaic_0001>

<bundles_post_ra>
// kernel: tpu_custom_call.1
= control target key start
LH: loop header
LB: loop body
LE: loop exit
PB: predicated region body
PF: predicated region fallthrough
CT: control target
= control target key end

     0   :  { %s3640_s0 = inlined_call_operand.hbm [shape: s32[24], index: 0, kind: input, shape index: {}]   ;;  %s3641_s1 = inlined_call_operand.vmem [shape: s32[24], index: 1, kind: input, shape index: {}]   ;;  %s3642_s2 = inlined_call_operand.hbm [shape: f32[1,1], index: 2, kind: output, shape index: {}]  }
   0x1   :  { %3658 = sst [smem:[#allocation38_spill]] %s3642_s2 }
   0x2   :  { %7 = vsyncpa [#allocation3], 0 }
   0x3   :  { %8 = vsyncpa [#allocation5], 0 }
   0x4   :  { %9 = vsyncpa [#allocation4], 0  ;;  %s24_s11 = sshll.u32 %s3641_s1, 4  ;;  %s1993_s14 = scalar_lea.hbm %s3640_s0, 16  ;;  %s25_s11 = int_to_ptr.vmem [resolvable:$true] %s24_s11 }
   0x5   :  { %p1994_p0 = scmp.ne.s32.totalorder %s3640_s0, %s1993_s14  ;;  %p1997_p1 = scmp.lt.u32.totalorder %s1993_s14, %s3640_s0 }
   0x7   :  { %p1999_p2 = pnand %p1997_p1, %p1994_p0 }
   0x9   :  { %2002 = shalt.err (!%p1999_p2)
}
   0xa   :  { %s2063_s19 = smov [#allocation2]   ;;  %s2003_s1 = scalar_lea.vmem %s25_s11, 16 }
   0xb   :  { %17 = dma.hbm_to_smem %s3640_s0, 16, %s2063_s19, [#allocation3]  }
   0xc   :  { %p2004_p3 = scmp.ne.s32.totalorder %s25_s11, %s2003_s1  ;;  %p2008_p4 = scmp.lt.s32.totalorder %s25_s11, %s25_s11 }
   0xd   :  { %p2009_p5 = scmp.lt.s32.totalorder %s2003_s1, %s2003_s1 }
   0xf   :  { %p2010_p6 = por %p2009_p5, %p2008_p4 }
  0x11   :  { %p2011_p7 = pnand %p2010_p6, %p2004_p3 }
  0x13   :  { %2014 = shalt.err (!%p2011_p7)
}
  0x14   :  { %s2064_s22 = smov [#allocation6]  }
  0x15   :  { %27 = dma.vmem_to_smem %s25_s11, 16, %s2064_s22, [#allocation5]  }
  0x16   :  { %2041 = dma.done.wait [#allocation3], 16  }
  0x17   :  { %2042 = vsyncadd [#allocation3], 4294967280 }
  0x18   :  { %2043 = dma.done.wait [#allocation5], 16  }
  0x19   :  { %2044 = vsyncadd [#allocation5], 4294967280 }
  0x1a   :  { %34 = sfence }
  0x1b   :  { %v35_v0 = vlaneseq  ;;  %s2097_s23 = sld [smem:[#allocation2]]  ;;  %s2099_s24 = sld [smem:[#allocation2 + $0x1]]  ;;  %v2207_v23 = vmov 0.0   ;;  %v2209_v24 = vmov 0.0   ;;  %v2211_v25 = vmov 0.0  }
  0x1c   :  { %s2101_s0 = sld [smem:[#allocation2 + $0x2]]  ;;  %s2103_s25 = sld [smem:[#allocation2 + $0x3]] }
  0x1d   :  { %v36_v1 = vshrl.u32 %v35_v0, 7  ;;  %s2105_s26 = sld [smem:[#allocation2 + $0x4]]  ;;  %s2107_s27 = sld [smem:[#allocation2 + $0x5]]  ;;  %v51_v2 = vand.u32 127, %v35_v0 }
  0x1e   :  { %s2109_s28 = sld [smem:[#allocation2 + $0x6]]  ;;  %s2111_s29 = sld [smem:[#allocation2 + $0x7]] }
  0x1f   :  { %v37_v3 = vadd.s32 8, %v36_v1  ;;  %v38_v4 = vadd.s32 16, %v36_v1  ;;  %v39_v5 = vadd.s32 24, %v36_v1  ;;  %v40_v6 = vadd.s32 32, %v36_v1  ;;  %s2113_s30 = sld [smem:[#allocation2 + $0x8]]  ;;  %s2115_s3 = sld [smem:[#allocation2 + $0x9]] }
  0x20   :  { %v41_v7 = vadd.s32 40, %v36_v1  ;;  %v42_v8 = vadd.s32 48, %v36_v1  ;;  %v43_v9 = vmul.u32 128, %v36_v1  ;;  %s2117_s4 = sld [smem:[#allocation2 + $0xa]]  ;;  %s2119_s5 = sld [smem:[#allocation2 + $0xb]] }
  0x21   :  { %v44_v10 = vmul.u32 128, %v37_v3  ;;  %v45_v11 = vmul.u32 128, %v38_v4  ;;  %s2123_s6 = sld [smem:[#allocation2 + $0xc]]  ;;  %s2125_s7 = sld [smem:[#allocation2 + $0xd]] }
  0x22   :  { %3659 = sst [smem:[#allocation11_spill]] %s2101_s0  ;;  %v46_v12 = vmul.u32 128, %v39_v5  ;;  %v47_v13 = vmul.u32 128, %v40_v6  ;;  %v2121_v14 = vadd.s32 %v51_v2, %v43_v9  ;;  %s2131_s8 = sld [smem:[#allocation2 + $0xe]] }
  0x23   :  { %v48_v15 = vmul.u32 128, %v41_v7  ;;  %v49_v16 = vmul.u32 128, %v42_v8  ;;  %v2127_v17 = vadd.s32 %v51_v2, %v44_v10  ;;  %v2129_v18 = vadd.s32 %v51_v2, %v45_v11  ;;  %s2133_s9 = sld [smem:[#allocation2 + $0xf]]  ;;  %s2139_s10 = sld [smem:[#allocation2 + $0x10]] }
  0x24   :  { %3660 = vst [vmem:[#allocation12_spill] sm:$0xff] %v2121_v14  ;;  %v2135_v19 = vadd.s32 %v51_v2, %v46_v12  ;;  %v2137_v20 = vadd.s32 %v51_v2, %v47_v13  ;;  %s2141_s11 = sld [smem:[#allocation2 + $0x11]]  ;;  %s2147_s12 = sld [smem:[#allocation2 + $0x12]] }
  0x25   :  { %3663 = vst [vmem:[#allocation15_spill] sm:$0xff] %v2127_v17  ;;  %3664 = vst [vmem:[#allocation16_spill] sm:$0xff] %v2129_v18  ;;  %v2143_v21 = vadd.s32 %v51_v2, %v48_v15  ;;  %v2145_v22 = vadd.s32 %v51_v2, %v49_v16  ;;  %s2149_s13 = sld [smem:[#allocation2 + $0x13]]  ;;  %s2151_s14 = sld [smem:[#allocation2 + $0x14]] }
  0x26   :  { %3667 = vst [vmem:[#allocation19_spill] sm:$0xff] %v2135_v19  ;;  %3668 = vst [vmem:[#allocation20_spill] sm:$0xff] %v2137_v20  ;;  %s2153_s15 = sld [smem:[#allocation2 + $0x15]]  ;;  %s2155_s16 = sld [smem:[#allocation2 + $0x16]] }
  0x27   :  { %3661 = sst [smem:[#allocation13_spill]] %s2123_s6  ;;  %s2157_s17 = sld [smem:[#allocation2 + $0x17]] }
  0x28   :  { %3662 = sst [smem:[#allocation14_spill]] %s2125_s7  ;;  %s2159_s18 = sld [smem:[#allocation6]] }
  0x29   :  { %3665 = sst [smem:[#allocation17_spill]] %s2131_s8  ;;  %s2161_s19 = sld [smem:[#allocation6 + $0x1]] }
  0x2a   :  { %3666 = sst [smem:[#allocation18_spill]] %s2133_s9  ;;  %s2163_s20 = sld [smem:[#allocation6 + $0x2]] }
  0x2b   :  { %3669 = sst [smem:[#allocation21_spill]] %s2139_s10  ;;  %s2165_s21 = sld [smem:[#allocation6 + $0x3]] }
  0x2c   :  { %3670 = sst [smem:[#allocation22_spill]] %s2141_s11  ;;  %s2167_s1 = sld [smem:[#allocation6 + $0x4]] }
  0x2d   :  { %3671 = sst [smem:[#allocation23_spill]] %s2147_s12  ;;  %s2169_s22 = sld [smem:[#allocation6 + $0x5]] }
  0x2e   :  { %3672 = sst [smem:[#allocation24_spill]] %s2149_s13  ;;  %s2171_s2 = sld [smem:[#allocation6 + $0x6]] }
  0x2f   :  { %3673 = sst [smem:[#allocation25_spill]] %s2151_s14  ;;  %s2173_s14 = sld [smem:[#allocation6 + $0x7]] }
  0x30   :  { %3674 = sst [smem:[#allocation26_spill]] %s2153_s15  ;;  %s2175_s15 = sld [smem:[#allocation6 + $0x8]] }
  0x31   :  { %3675 = sst [smem:[#allocation27_spill]] %s2155_s16  ;;  %s2177_s16 = sld [smem:[#allocation6 + $0x9]] }
  0x32   :  { %3676 = sst [smem:[#allocation28_spill]] %s2157_s17  ;;  %s2179_s17 = sld [smem:[#allocation6 + $0xa]] }
  0x33   :  { %3677 = sst [smem:[#allocation29_spill]] %s2167_s1  ;;  %s2181_s13 = sld [smem:[#allocation6 + $0xb]] }
  0x34   :  { %3678 = sst [smem:[#allocation30_spill]] %s2171_s2  ;;  %s2183_s12 = sld [smem:[#allocation6 + $0xc]] }
  0x35   :  { %s2185_s11 = sld [smem:[#allocation6 + $0xd]]  ;;  %s2187_s10 = sld [smem:[#allocation6 + $0xe]] }
  0x36   :  { %3679 = sst [smem:[#allocation31_spill]] %s2175_s15  ;;  %s2191_s8 = sld [smem:[#allocation6 + $0x10]] }
  0x37   :  { %3680 = sst [smem:[#allocation32_spill]] %s2177_s16  ;;  %s2189_s9 = sld [smem:[#allocation6 + $0xf]] }
  0x38   :  { %3681 = sst [smem:[#allocation33_spill]] %s2179_s17  ;;  %s2195_s6 = sld [smem:[#allocation6 + $0x12]] }
  0x39   :  { %3682 = sst [smem:[#allocation34_spill]] %s2181_s13  ;;  %s2193_s7 = sld [smem:[#allocation6 + $0x11]] }
  0x3a   :  { %3683 = sst [smem:[#allocation35_spill]] %s2183_s12  ;;  %s2199_s16 = sld [smem:[#allocation6 + $0x14]] }
  0x3b   :  { %s2197_s15 = sld [smem:[#allocation6 + $0x13]]  ;;  %s2201_s17 = sld [smem:[#allocation6 + $0x15]] }
  0x3c   :  { %3684 = sst [smem:[#allocation36_spill]] %s2191_s8  ;;  %s2203_s13 = sld [smem:[#allocation6 + $0x16]] }
  0x3d   :  { %s2205_s12 = sld [smem:[#allocation6 + $0x17]]  ;;  %s2213_s8 = smov 0  }
  0x43   :  { %3685 = sst [smem:[#allocation37_spill]] %s2205_s12 }
  0x44 LB: > { %s3686_s0 = sld [smem:[#allocation11_spill]]  ;;  %s116_s12 = smul.u32 7168, %s2061_s8  ;;  %v125_v27 = vstv %s2097_s23  ;;  %v154_v28 = vstv %s2099_s24  ;;  %v3687_v14 = vld [vmem:[#allocation12_spill] sm:$0xff]  ;;  %v3688_v17 = vld [vmem:[#allocation15_spill] sm:$0xff]  ;;  %v3689_v18 = vld [vmem:[#allocation16_spill] sm:$0xff]  ;;  %v2254_v37 = vstv %s2103_s25  ;;  %v2257_v38 = vstv %s2105_s26  ;;  %s2061_s8 = sphi %s2213_s8, %s112_s8   ;;  %v2057_v25 = vphi %v2211_v25, %v3752_v25   ;;  %v2053_v24 = vphi %v2209_v24, %v3751_v24   ;;  %v2049_v23 = vphi %v2207_v23, %v3750_v23  }
  0x45   : > { %v3690_v19 = vld [vmem:[#allocation19_spill] sm:$0xff]  ;;  %v3691_v20 = vld [vmem:[#allocation20_spill] sm:$0xff]  ;;  %v2260_v39 = vstv %s2107_s27  ;;  %v2264_v40 = vstv %s2109_s28  ;;  %v2267_v41 = vstv %s2111_s29  ;;  %v2270_v42 = vstv %s2159_s18  ;;  %s3692_s1 = sld [smem:[#allocation29_spill]]  ;;  %s3694_s2 = sld [smem:[#allocation30_spill]] }
  0x46   : > { %v117_v26 = vstv %s116_s12  ;;  %v2065_v43 = vmov 0.0   ;;  %s3700_s12 = sld [smem:[#allocation13_spill]]  ;;  %s112_s8 = sadd.s32 1, %s2061_s8  }
  0x47   : > { %v2231_v29 = vadd.s32 %v117_v26, %v3687_v14  ;;  %v2234_v30 = vadd.s32 %v117_v26, %v3688_v17  ;;  %v2237_v31 = vadd.s32 %v117_v26, %v3689_v18  ;;  %v2240_v32 = vadd.s32 %v117_v26, %v3690_v19  ;;  %p109_p8 = scmp.ge.s32.totalorder %s112_s8, 7  }
  0x48   : > { %v2243_v33 = vadd.s32 %v117_v26, %v3691_v20  ;;  %v2246_v34 = vadd.s32 %v117_v26, %v2143_v21  ;;  %v2249_v35 = vadd.s32 %v117_v26, %v2145_v22  ;;  %v1379_v19 = vstv %s2197_s15  ;;  %s3753_s26 = sld [smem:[#allocation38_spill]] (%p109_p8) }
  0x49   : > { %vm126_vm0 = vcmp.ge.s32.totalorder %v2231_v29, %v125_v27  ;;  %vm127_vm1 = vcmp.ge.s32.totalorder %v2234_v30, %v125_v27  ;;  %vm128_vm2 = vcmp.ge.s32.totalorder %v2237_v31, %v125_v27  ;;  %vm129_vm3 = vcmp.ge.s32.totalorder %v2240_v32, %v125_v27 }
  0x4a   : > { %v183_v36 = vstv %s3686_s0  ;;  %vm130_vm4 = vcmp.ge.s32.totalorder %v2243_v33, %v125_v27  ;;  %vm131_vm5 = vcmp.ge.s32.totalorder %v2246_v34, %v125_v27  ;;  %vm132_vm6 = vcmp.ge.s32.totalorder %v2249_v35, %v125_v27  ;;  %s3701_s0 = sld [smem:[#allocation14_spill]] }
  0x4b   : > { %v1659_v44 = vsel %vm126_vm0, 1.0, %v2065_v43  ;;  %vm155_vm7 = vcmp.ge.s32.totalorder %v2231_v29, %v154_v28  ;;  %vm156_vm8 = vcmp.ge.s32.totalorder %v2234_v30, %v154_v28  ;;  %v1660_v45 = vsel %vm127_vm1, 1.0, %v2065_v43 }
  0x4c   : > { %vm157_vm9 = vcmp.ge.s32.totalorder %v2237_v31, %v154_v28  ;;  %vm158_vm10 = vcmp.ge.s32.totalorder %v2240_v32, %v154_v28  ;;  %vm159_vm11 = vcmp.ge.s32.totalorder %v2243_v33, %v154_v28  ;;  %v1661_v46 = vsel %vm128_vm2, 1.0, %v2065_v43 }
  0x4d   : > { %vm160_vm12 = vcmp.ge.s32.totalorder %v2246_v34, %v154_v28  ;;  %vm161_vm13 = vcmp.ge.s32.totalorder %v2249_v35, %v154_v28  ;;  %v1666_v47 = vsel %vm155_vm7, 1.0, %v2065_v43  ;;  %v1662_v48 = vsel %vm129_vm3, 1.0, %v2065_v43 }
  0x4e   : > { %v1663_v49 = vsel %vm130_vm4, 1.0, %v2065_v43  ;;  %v1664_v50 = vsel %vm131_vm5, 1.0, %v2065_v43  ;;  %v1667_v51 = vsel %vm156_vm8, 1.0, %v2065_v43  ;;  %v1665_v52 = vsel %vm132_vm6, 1.0, %v2065_v43  ;;  %s2015_s27 = scalar_lea.hbm (%p109_p8), %s3753_s26, 16 }
  0x4f   : > { %v1668_v53 = vsel %vm157_vm9, 1.0, %v2065_v43  ;;  %v1669_v54 = vsel %vm158_vm10, 1.0, %v2065_v43  ;;  %v1670_v55 = vsel %vm159_vm11, 1.0, %v2065_v43  ;;  %v1671_v56 = vsel %vm160_vm12, 1.0, %v2065_v43  ;;  %p2016_p9 = scmp.ne.s32.totalorder (%p109_p8), %s3753_s26, %s2015_s27  ;;  %p2019_p10 = scmp.lt.u32.totalorder (%p109_p8), %s2015_s27, %s3753_s26 }
  0x50   : > { %v1672_v57 = vsel %vm161_vm13, 1.0, %v2065_v43  ;;  %v176_v58 = vadd.f32 %v1666_v47, %v1659_v44  ;;  %vm184_vm14 = vcmp.ge.s32.totalorder %v2231_v29, %v183_v36  ;;  %v177_v59 = vadd.f32 %v1667_v51, %v1660_v45 }
  0x51   : > { %vm185_vm15 = vcmp.ge.s32.totalorder %v2234_v30, %v183_v36  ;;  %vm186_vm0 = vcmp.ge.s32.totalorder %v2237_v31, %v183_v36  ;;  %vm187_vm1 = vcmp.ge.s32.totalorder %v2240_v32, %v183_v36  ;;  %vm188_vm2 = vcmp.ge.s32.totalorder %v2243_v33, %v183_v36  ;;  %p2021_p11 = pnand (%p109_p8), %p2019_p10, %p2016_p9 }
  0x52   : > { %vm189_vm3 = vcmp.ge.s32.totalorder %v2246_v34, %v183_v36  ;;  %vm190_vm4 = vcmp.ge.s32.totalorder %v2249_v35, %v183_v36  ;;  %v1673_v60 = vsel %vm184_vm14, 1.0, %v2065_v43  ;;  %v178_v61 = vadd.f32 %v1668_v53, %v1661_v46 }
  0x53   : > { %v179_v62 = vadd.f32 %v1669_v54, %v1662_v48  ;;  %v180_v63 = vadd.f32 %v1670_v55, %v1663_v49  ;;  %v1674_v0 = vsel %vm185_vm15, 1.0, %v2065_v43  ;;  %v181_v1 = vadd.f32 %v1671_v56, %v1664_v50 }
  0x54   : > { %v182_v2 = vadd.f32 %v1672_v57, %v1665_v52  ;;  %v1675_v3 = vsel %vm186_vm0, 1.0, %v2065_v43  ;;  %v1676_v4 = vsel %vm187_vm1, 1.0, %v2065_v43  ;;  %v1677_v5 = vsel %vm188_vm2, 1.0, %v2065_v43 }
  0x55   : > { %v1678_v6 = vsel %vm189_vm3, 1.0, %v2065_v43  ;;  %v1679_v7 = vsel %vm190_vm4, 1.0, %v2065_v43  ;;  %v205_v8 = vadd.f32 %v1673_v60, %v176_v58  ;;  %v206_v9 = vadd.f32 %v1674_v0, %v177_v59 }
  0x56   : > { %vm213_vm5 = vcmp.ge.s32.totalorder %v2231_v29, %v2254_v37  ;;  %vm214_vm6 = vcmp.ge.s32.totalorder %v2234_v30, %v2254_v37  ;;  %vm215_vm7 = vcmp.ge.s32.totalorder %v2237_v31, %v2254_v37  ;;  %vm216_vm8 = vcmp.ge.s32.totalorder %v2240_v32, %v2254_v37 }
  0x57   : > { %vm217_vm9 = vcmp.ge.s32.totalorder %v2243_v33, %v2254_v37  ;;  %vm218_vm10 = vcmp.ge.s32.totalorder %v2246_v34, %v2254_v37  ;;  %vm219_vm11 = vcmp.ge.s32.totalorder %v2249_v35, %v2254_v37  ;;  %v207_v10 = vadd.f32 %v1675_v3, %v178_v61 }
  0x58   : > { %v208_v11 = vadd.f32 %v1676_v4, %v179_v62  ;;  %v1680_v12 = vsel %vm213_vm5, 1.0, %v2065_v43  ;;  %v1681_v13 = vsel %vm214_vm6, 1.0, %v2065_v43  ;;  %v209_v15 = vadd.f32 %v1677_v5, %v180_v63 }
  0x59   : > { %v210_v16 = vadd.f32 %v1678_v6, %v181_v1  ;;  %v211_v26 = vadd.f32 %v1679_v7, %v182_v2  ;;  %v1682_v27 = vsel %vm215_vm7, 1.0, %v2065_v43  ;;  %v1683_v28 = vsel %vm216_vm8, 1.0, %v2065_v43 }
  0x5a   : > { %v1684_v36 = vsel %vm217_vm9, 1.0, %v2065_v43  ;;  %v1685_v44 = vsel %vm218_vm10, 1.0, %v2065_v43  ;;  %v1686_v45 = vsel %vm219_vm11, 1.0, %v2065_v43  ;;  %v234_v37 = vadd.f32 %v1680_v12, %v205_v8 }
  0x5b   : > { %v235_v46 = vadd.f32 %v1681_v13, %v206_v9  ;;  %vm242_vm12 = vcmp.ge.s32.totalorder %v2231_v29, %v2257_v38  ;;  %vm243_vm13 = vcmp.ge.s32.totalorder %v2234_v30, %v2257_v38  ;;  %vm244_vm14 = vcmp.ge.s32.totalorder %v2237_v31, %v2257_v38 }
  0x5c   : > { %vm245_vm15 = vcmp.ge.s32.totalorder %v2240_v32, %v2257_v38  ;;  %vm246_vm0 = vcmp.ge.s32.totalorder %v2243_v33, %v2257_v38  ;;  %vm247_vm1 = vcmp.ge.s32.totalorder %v2246_v34, %v2257_v38  ;;  %v236_v47 = vadd.f32 %v1682_v27, %v207_v10 }
  0x5d   : > { %v237_v48 = vadd.f32 %v1683_v28, %v208_v11  ;;  %vm248_vm2 = vcmp.ge.s32.totalorder %v2249_v35, %v2257_v38  ;;  %v1687_v49 = vsel %vm242_vm12, 1.0, %v2065_v43  ;;  %v238_v50 = vadd.f32 %v1684_v36, %v209_v15 }
  0x5e   : > { %v239_v51 = vadd.f32 %v1685_v44, %v210_v16  ;;  %v240_v52 = vadd.f32 %v1686_v45, %v211_v26  ;;  %v1688_v53 = vsel %vm243_vm13, 1.0, %v2065_v43  ;;  %v1689_v54 = vsel %vm244_vm14, 1.0, %v2065_v43 }
  0x5f   : > { %v1690_v55 = vsel %vm245_vm15, 1.0, %v2065_v43  ;;  %v1691_v56 = vsel %vm246_vm0, 1.0, %v2065_v43  ;;  %v1692_v57 = vsel %vm247_vm1, 1.0, %v2065_v43  ;;  %v1693_v58 = vsel %vm248_vm2, 1.0, %v2065_v43 }
  0x60   : > { %v263_v59 = vadd.f32 %v1687_v49, %v234_v37  ;;  %vm271_vm3 = vcmp.ge.s32.totalorder %v2231_v29, %v2260_v39  ;;  %vm272_vm4 = vcmp.ge.s32.totalorder %v2234_v30, %v2260_v39  ;;  %v264_v38 = vadd.f32 %v1688_v53, %v235_v46 }
  0x61   : > { %vm273_vm5 = vcmp.ge.s32.totalorder %v2237_v31, %v2260_v39  ;;  %vm274_vm6 = vcmp.ge.s32.totalorder %v2240_v32, %v2260_v39  ;;  %vm275_vm7 = vcmp.ge.s32.totalorder %v2243_v33, %v2260_v39  ;;  %v265_v60 = vadd.f32 %v1689_v54, %v236_v47 }
  0x62   : > { %vm276_vm8 = vcmp.ge.s32.totalorder %v2246_v34, %v2260_v39  ;;  %vm277_vm9 = vcmp.ge.s32.totalorder %v2249_v35, %v2260_v39  ;;  %v1694_v61 = vsel %vm271_vm3, 1.0, %v2065_v43  ;;  %v266_v62 = vadd.f32 %v1690_v55, %v237_v48 }
  0x63   : > { %v267_v63 = vadd.f32 %v1691_v56, %v238_v50  ;;  %v268_v0 = vadd.f32 %v1692_v57, %v239_v51  ;;  %v1695_v1 = vsel %vm272_vm4, 1.0, %v2065_v43  ;;  %v269_v2 = vadd.f32 %v1693_v58, %v240_v52 }
  0x64   : > { %v1696_v3 = vsel %vm273_vm5, 1.0, %v2065_v43  ;;  %v1697_v4 = vsel %vm274_vm6, 1.0, %v2065_v43  ;;  %v1698_v5 = vsel %vm275_vm7, 1.0, %v2065_v43  ;;  %v1699_v6 = vsel %vm276_vm8, 1.0, %v2065_v43 }
  0x65   : > { %v1700_v7 = vsel %vm277_vm9, 1.0, %v2065_v43  ;;  %v292_v8 = vadd.f32 %v1694_v61, %v263_v59  ;;  %vm300_vm10 = vcmp.ge.s32.totalorder %v2231_v29, %v2264_v40  ;;  %v293_v39 = vadd.f32 %v1695_v1, %v264_v38 }
  0x66   : > { %vm301_vm11 = vcmp.ge.s32.totalorder %v2234_v30, %v2264_v40  ;;  %vm302_vm12 = vcmp.ge.s32.totalorder %v2237_v31, %v2264_v40  ;;  %vm303_vm13 = vcmp.ge.s32.totalorder %v2240_v32, %v2264_v40  ;;  %vm304_vm14 = vcmp.ge.s32.totalorder %v2243_v33, %v2264_v40 }
  0x67   : > { %vm3645_vm15 = vcmp.ge.s32.totalorder %v2246_v34, %v2264_v40  ;;  %vm3644_vm0 = vcmp.ge.s32.totalorder %v2249_v35, %v2264_v40  ;;  %v1701_v9 = vsel %vm300_vm10, 1.0, %v2065_v43  ;;  %v294_v10 = vadd.f32 %v1696_v3, %v265_v60 }
  0x68   : > { %v295_v11 = vadd.f32 %v1697_v4, %v266_v62  ;;  %v296_v12 = vadd.f32 %v1698_v5, %v267_v63  ;;  %v1702_v13 = vsel %vm301_vm11, 1.0, %v2065_v43  ;;  %v297_v15 = vadd.f32 %v1699_v6, %v268_v0 }
  0x69   : > { %v298_v16 = vadd.f32 %v1700_v7, %v269_v2  ;;  %v1703_v26 = vsel %vm302_vm12, 1.0, %v2065_v43  ;;  %v1704_v27 = vsel %vm303_vm13, 1.0, %v2065_v43  ;;  %v1705_v28 = vsel %vm304_vm14, 1.0, %v2065_v43 }
  0x6a   : > { %v1706_v36 = vsel %vm3645_vm15, 1.0, %v2065_v43  ;;  %v1707_v44 = vsel %vm3644_vm0, 1.0, %v2065_v43  ;;  %v321_v45 = vadd.f32 %v1701_v9, %v292_v8  ;;  %v322_v37 = vadd.f32 %v1702_v13, %v293_v39 }
  0x6b   : > { %vm329_vm1 = vcmp.lt.s32.totalorder %v2231_v29, %v2267_v41  ;;  %vm330_vm2 = vcmp.lt.s32.totalorder %v2234_v30, %v2267_v41  ;;  %vm331_vm3 = vcmp.lt.s32.totalorder %v2237_v31, %v2267_v41  ;;  %v323_v46 = vadd.f32 %v1703_v26, %v294_v10 }
  0x6c   : > { %vm336_vm4 = vmand %vm300_vm10, %vm329_vm1  ;;  %v379_v47 = vstv %s2161_s19  ;;  %v2436_v48 = vstv %s2163_s20  ;;  %v2438_v49 = vadd.f32 %v1704_v27, %v295_v11  ;;  %v2440_v50 = vadd.f32 %v1705_v28, %v296_v12 }
  0x6d   : > { %vm337_vm5 = vmand %vm301_vm11, %vm330_vm2  ;;  %v2446_v51 = vstv %s2165_s21  ;;  %v2449_v52 = vstv %s3692_s1  ;;  %v2451_v53 = vadd.f32 %v1706_v36, %v297_v15  ;;  %v2453_v54 = vadd.f32 %v1707_v44, %v298_v16  ;;  %s3702_s1 = sld [smem:[#allocation17_spill]] }
  0x6e   : > { %vm338_vm6 = vmand %vm302_vm12, %vm331_vm3  ;;  %vm351_vm7 = vcmp.ge.s32.totalorder %v2231_v29, %v2270_v42  ;;  %vm352_vm8 = vcmp.ge.s32.totalorder %v2234_v30, %v2270_v42  ;;  %v2462_v55 = vsel %vm336_vm4, 0.0, %v321_v45  ;;  %v2464_v56 = vsel %vm337_vm5, 0.0, %v322_v37 }
  0x6f   : > { %vm353_vm9 = vcmp.ge.s32.totalorder %v2237_v31, %v2270_v42  ;;  %vm354_vm10 = vcmp.ge.s32.totalorder %v2240_v32, %v2270_v42  ;;  %v2470_v57 = vsel %vm338_vm6, 0.0, %v323_v46  ;;  %vm355_vm11 = vcmp.ge.s32.totalorder %v2243_v33, %v2270_v42 }
  0x70   : > { %vm356_vm12 = vcmp.ge.s32.totalorder %v2246_v34, %v2270_v42  ;;  %vm357_vm1 = vcmp.ge.s32.totalorder %v2249_v35, %v2270_v42  ;;  %vm332_vm2 = vcmp.lt.s32.totalorder %v2240_v32, %v2267_v41  ;;  %v1708_v58 = vsel %vm351_vm7, 1.0, %v2065_v43 }
  0x71   : > { %v1709_v59 = vsel %vm352_vm8, 1.0, %v2065_v43  ;;  %vm380_vm3 = vcmp.ge.s32.totalorder %v2231_v29, %v379_v47  ;;  %vm381_vm4 = vcmp.ge.s32.totalorder %v2234_v30, %v379_v47  ;;  %v1710_v38 = vsel %vm353_vm9, 1.0, %v2065_v43 }
  0x72   : > { %vm382_vm5 = vcmp.ge.s32.totalorder %v2237_v31, %v379_v47  ;;  %vm383_vm6 = vcmp.ge.s32.totalorder %v2240_v32, %v379_v47  ;;  %vm384_vm0 = vcmp.ge.s32.totalorder %v2243_v33, %v379_v47  ;;  %v1711_v60 = vsel %vm354_vm10, 1.0, %v2065_v43 }
  0x73   : > { %vm385_vm15 = vcmp.ge.s32.totalorder %v2246_v34, %v379_v47  ;;  %vm386_vm7 = vcmp.ge.s32.totalorder %v2249_v35, %v379_v47  ;;  %v1715_v61 = vsel %vm380_vm3, 1.0, %v2065_v43  ;;  %v1712_v62 = vsel %vm355_vm11, 1.0, %v2065_v43 }
  0x74   : > { %v1716_v63 = vsel %vm381_vm4, 1.0, %v2065_v43  ;;  %v1717_v0 = vsel %vm382_vm5, 1.0, %v2065_v43  ;;  %v1718_v1 = vsel %vm383_vm6, 1.0, %v2065_v43  ;;  %v1713_v2 = vsel %vm356_vm12, 1.0, %v2065_v43  ;;  %vm339_vm4 = vmand %vm303_vm13, %vm332_vm2 }
  0x75   : > { %v1714_v3 = vsel %vm357_vm1, 1.0, %v2065_v43  ;;  %v1719_v4 = vsel %vm384_vm0, 1.0, %v2065_v43  ;;  %v1720_v5 = vsel %vm385_vm15, 1.0, %v2065_v43  ;;  %vm333_vm8 = vcmp.lt.s32.totalorder %v2243_v33, %v2267_v41 }
  0x76   : > { %v1721_v6 = vsel %vm386_vm7, 1.0, %v2065_v43  ;;  %v401_v7 = vadd.f32 %v1715_v61, %v1708_v58  ;;  %v402_v8 = vadd.f32 %v1716_v63, %v1709_v59  ;;  %v403_v39 = vadd.f32 %v1717_v0, %v1710_v38 }
  0x77   : > { %vm334_vm9 = vcmp.lt.s32.totalorder %v2246_v34, %v2267_v41  ;;  %v404_v9 = vadd.f32 %v1718_v1, %v1711_v60  ;;  %vm409_vm10 = vcmp.ge.s32.totalorder %v2231_v29, %v2436_v48  ;;  %vm410_vm0 = vcmp.ge.s32.totalorder %v2234_v30, %v2436_v48 }
  0x78   : > { %vm411_vm15 = vcmp.ge.s32.totalorder %v2237_v31, %v2436_v48  ;;  %vm412_vm11 = vcmp.ge.s32.totalorder %v2240_v32, %v2436_v48  ;;  %vm413_vm12 = vcmp.ge.s32.totalorder %v2243_v33, %v2436_v48  ;;  %vm414_vm1 = vcmp.ge.s32.totalorder %v2246_v34, %v2436_v48 }
  0x79   : > { %vm415_vm3 = vcmp.ge.s32.totalorder %v2249_v35, %v2436_v48  ;;  %v1722_v42 = vsel %vm409_vm10, 1.0, %v2065_v43  ;;  %v1723_v10 = vsel %vm410_vm0, 1.0, %v2065_v43  ;;  %v1724_v11 = vsel %vm411_vm15, 1.0, %v2065_v43  ;;  %vm340_vm15 = vmand %vm304_vm14, %vm333_vm8 }
  0x7a   : > { %v1725_v12 = vsel %vm412_vm11, 1.0, %v2065_v43  ;;  %v405_v13 = vadd.f32 %v1719_v4, %v1712_v62  ;;  %v406_v15 = vadd.f32 %v1720_v5, %v1713_v2  ;;  %v407_v16 = vadd.f32 %v1721_v6, %v1714_v3 }
  0x7b   : > { %v1726_v26 = vsel %vm413_vm12, 1.0, %v2065_v43  ;;  %v1727_v27 = vsel %vm414_vm1, 1.0, %v2065_v43  ;;  %v1728_v28 = vsel %vm415_vm3, 1.0, %v2065_v43  ;;  %v430_v36 = vadd.f32 %v1722_v42, %v401_v7 }
  0x7c   : > { %v431_v44 = vadd.f32 %v1723_v10, %v402_v8  ;;  %v432_v45 = vadd.f32 %v1724_v11, %v403_v39  ;;  %v433_v37 = vadd.f32 %v1725_v12, %v404_v9  ;;  %vm438_vm5 = vcmp.ge.s32.totalorder %v2231_v29, %v2446_v51 }
  0x7d   : > { %vm439_vm6 = vcmp.ge.s32.totalorder %v2234_v30, %v2446_v51  ;;  %vm440_vm7 = vcmp.ge.s32.totalorder %v2237_v31, %v2446_v51  ;;  %vm441_vm10 = vcmp.ge.s32.totalorder %v2240_v32, %v2446_v51  ;;  %vm442_vm0 = vcmp.ge.s32.totalorder %v2243_v33, %v2446_v51 }
  0x7e   : > { %vm443_vm13 = vcmp.ge.s32.totalorder %v2246_v34, %v2446_v51  ;;  %vm444_vm2 = vcmp.ge.s32.totalorder %v2249_v35, %v2446_v51  ;;  %v1729_v46 = vsel %vm438_vm5, 1.0, %v2065_v43  ;;  %v1730_v47 = vsel %vm439_vm6, 1.0, %v2065_v43 }
  0x7f   : > { %v1731_v48 = vsel %vm440_vm7, 1.0, %v2065_v43  ;;  %v2559_v58 = vsel %vm339_vm4, 0.0, %v2438_v49  ;;  %v434_v59 = vadd.f32 %v1726_v26, %v405_v13  ;;  %v435_v38 = vadd.f32 %v1727_v27, %v406_v15 }
  0x80   : > { %v1732_v60 = vsel %vm441_vm10, 1.0, %v2065_v43  ;;  %v436_v61 = vadd.f32 %v1728_v28, %v407_v16  ;;  %v1733_v62 = vsel %vm442_vm0, 1.0, %v2065_v43  ;;  %v1734_v63 = vsel %vm443_vm13, 1.0, %v2065_v43 }
  0x81   : > { %v1735_v51 = vsel %vm444_vm2, 1.0, %v2065_v43  ;;  %v459_v49 = vadd.f32 %v1729_v46, %v430_v36  ;;  %v460_v0 = vadd.f32 %v1730_v47, %v431_v44  ;;  %v461_v1 = vadd.f32 %v1731_v48, %v432_v45 }
  0x82   : > { %vm467_vm11 = vcmp.ge.s32.totalorder %v2231_v29, %v2449_v52  ;;  %vm3693_vm12 = vcmp.ge.s32.totalorder %v2246_v34, %v2264_v40  ;;  %v462_v2 = vadd.f32 %v1732_v60, %v433_v37  ;;  %vm468_vm3 = vcmp.ge.s32.totalorder %v2234_v30, %v2449_v52 }
  0x83   : > { %vm341_vm1 = vmand %vm3693_vm12, %vm334_vm9  ;;  %vm469_vm14 = vcmp.ge.s32.totalorder %v2237_v31, %v2449_v52  ;;  %vm470_vm8 = vcmp.ge.s32.totalorder %v2240_v32, %v2449_v52  ;;  %vm471_vm4 = vcmp.ge.s32.totalorder %v2243_v33, %v2449_v52  ;;  %vm472_vm5 = vcmp.ge.s32.totalorder %v2246_v34, %v2449_v52 }
  0x84   : > { %vm473_vm6 = vcmp.ge.s32.totalorder %v2249_v35, %v2449_v52  ;;  %v1736_v3 = vsel %vm467_vm11, 1.0, %v2065_v43  ;;  %v2593_v4 = vsel %vm340_vm15, 0.0, %v2440_v50  ;;  %v1737_v5 = vsel %vm468_vm3, 1.0, %v2065_v43 }
  0x85   : > { %v1738_v6 = vsel %vm469_vm14, 1.0, %v2065_v43  ;;  %v1739_v7 = vsel %vm470_vm8, 1.0, %v2065_v43  ;;  %v2599_v8 = vsel %vm341_vm1, 0.0, %v2451_v53  ;;  %v463_v39 = vadd.f32 %v1733_v62, %v434_v59 }
  0x86   : > { %v464_v9 = vadd.f32 %v1734_v63, %v435_v38  ;;  %v465_v42 = vadd.f32 %v1735_v51, %v436_v61  ;;  %v1740_v52 = vsel %vm471_vm4, 1.0, %v2065_v43  ;;  %v1741_v10 = vsel %vm472_vm5, 1.0, %v2065_v43 }
  0x87   : > { %v1742_v50 = vsel %vm473_vm6, 1.0, %v2065_v43  ;;  %v488_v11 = vadd.f32 %v1736_v3, %v459_v49  ;;  %vm335_vm9 = vcmp.lt.s32.totalorder %v2249_v35, %v2267_v41  ;;  %v489_v12 = vadd.f32 %v1737_v5, %v460_v0 }
  0x88   : > { %v490_v13 = vadd.f32 %v1738_v6, %v461_v1  ;;  %v491_v15 = vadd.f32 %v1739_v7, %v462_v2  ;;  %v495_v16 = vstv %s2169_s22  ;;  %v492_v26 = vadd.f32 %v1740_v52, %v463_v39 }
  0x89   : > { %vm496_vm7 = vcmp.ge.s32.totalorder %v2231_v29, %v495_v16  ;;  %vm497_vm10 = vcmp.ge.s32.totalorder %v2234_v30, %v495_v16  ;;  %vm498_vm0 = vcmp.ge.s32.totalorder %v2237_v31, %v495_v16  ;;  %vm499_vm13 = vcmp.ge.s32.totalorder %v2240_v32, %v495_v16 }
  0x8a   : > { %vm500_vm2 = vcmp.ge.s32.totalorder %v2243_v33, %v495_v16  ;;  %vm501_vm15 = vcmp.ge.s32.totalorder %v2246_v34, %v495_v16  ;;  %vm502_vm11 = vcmp.ge.s32.totalorder %v2249_v35, %v495_v16  ;;  %v1743_v53 = vsel %vm496_vm7, 1.0, %v2065_v43 }
  0x8b   : > { %v493_v27 = vadd.f32 %v1741_v10, %v464_v9  ;;  %v1744_v28 = vsel %vm497_vm10, 1.0, %v2065_v43  ;;  %v2617_v36 = vstv %s3694_s2  ;;  %v494_v44 = vadd.f32 %v1742_v50, %v465_v42  ;;  %s3717_s2 = sld [smem:[#allocation26_spill]] }
  0x8c   : > { %v1745_v45 = vsel %vm498_vm0, 1.0, %v2065_v43  ;;  %v1746_v37 = vsel %vm499_vm13, 1.0, %v2065_v43  ;;  %v553_v46 = vstv %s2173_s14  ;;  %v1747_v47 = vsel %vm500_vm2, 1.0, %v2065_v43 }
  0x8d   : > { %v1748_v48 = vsel %vm501_vm15, 1.0, %v2065_v43  ;;  %v1749_v59 = vsel %vm502_vm11, 1.0, %v2065_v43  ;;  %v517_v38 = vadd.f32 %v1743_v53, %v488_v11  ;;  %v518_v60 = vadd.f32 %v1744_v28, %v489_v12 }
  0x8e   : > { %vm525_vm12 = vcmp.ge.s32.totalorder %v2231_v29, %v2617_v36  ;;  %vm526_vm1 = vcmp.ge.s32.totalorder %v2234_v30, %v2617_v36  ;;  %vm527_vm3 = vcmp.ge.s32.totalorder %v2237_v31, %v2617_v36  ;;  %v519_v61 = vadd.f32 %v1745_v45, %v490_v13 }
  0x8f   : > { %v520_v62 = vadd.f32 %v1746_v37, %v491_v15  ;;  %vm528_vm14 = vcmp.ge.s32.totalorder %v2240_v32, %v2617_v36  ;;  %vm529_vm8 = vcmp.ge.s32.totalorder %v2243_v33, %v2617_v36  ;;  %vm530_vm4 = vcmp.ge.s32.totalorder %v2246_v34, %v2617_v36 }
  0x90   : > { %v1750_v63 = vsel %vm525_vm12, 1.0, %v2065_v43  ;;  %v1751_v51 = vsel %vm526_vm1, 1.0, %v2065_v43  ;;  %v1752_v49 = vsel %vm527_vm3, 1.0, %v2065_v43  ;;  %v521_v0 = vadd.f32 %v1747_v47, %v492_v26 }
  0x91   : > { %vm3646_vm5 = vcmp.ge.s32.totalorder %v2249_v35, %v2617_v36  ;;  %v1753_v1 = vsel %vm528_vm14, 1.0, %v2065_v43  ;;  %v546_v2 = vadd.f32 %v1750_v63, %v517_v38  ;;  %v522_v3 = vadd.f32 %v1748_v48, %v493_v27 }
  0x92   : > { %v523_v5 = vadd.f32 %v1749_v59, %v494_v44  ;;  %v1754_v6 = vsel %vm529_vm8, 1.0, %v2065_v43  ;;  %v547_v7 = vadd.f32 %v1751_v51, %v518_v60  ;;  %vm3695_vm6 = vcmp.ge.s32.totalorder %v2249_v35, %v2264_v40 }
  0x93   : > { %vm2665_vm7 = vmand %vm3695_vm6, %vm335_vm9  ;;  %v1755_v9 = vsel %vm530_vm4, 1.0, %v2065_v43  ;;  %v548_v42 = vadd.f32 %v1752_v49, %v519_v61  ;;  %vm554_vm10 = vcmp.lt.s32.totalorder %v2231_v29, %v553_v46  ;;  %vm555_vm0 = vcmp.lt.s32.totalorder %v2234_v30, %v553_v46 }
  0x94   : > { %v1756_v41 = vsel %vm3646_vm5, 1.0, %v2065_v43  ;;  %v549_v40 = vadd.f32 %v1753_v1, %v520_v62  ;;  %vm556_vm9 = vcmp.lt.s32.totalorder %v2237_v31, %v553_v46  ;;  %vm557_vm13 = vcmp.lt.s32.totalorder %v2240_v32, %v553_v46  ;;  %vm561_vm2 = vmand %vm525_vm12, %vm554_vm10 }
  0x95   : > { %v550_v52 = vadd.f32 %v1754_v6, %v521_v0  ;;  %vm558_vm15 = vcmp.lt.s32.totalorder %v2243_v33, %v553_v46  ;;  %vm562_vm11 = vmand %vm526_vm1, %vm555_vm0  ;;  %v2688_v10 = vsel %vm561_vm2, 0.0, %v546_v2  ;;  %v596_v50 = vstv %s2113_s30 }
  0x96   : > { %v551_v11 = vadd.f32 %v1755_v9, %v522_v3  ;;  %vm559_vm6 = vcmp.lt.s32.totalorder %v2246_v34, %v553_v46  ;;  %vm563_vm5 = vmand %vm527_vm3, %vm556_vm9  ;;  %v2695_v12 = vsel %vm562_vm11, 0.0, %v547_v7  ;;  %v575_v13 = vsub.f32 %v2462_v55, %v2688_v10 }
  0x97   : > { %v552_v15 = vadd.f32 %v1756_v41, %v523_v5  ;;  %vm560_vm12 = vcmp.lt.s32.totalorder %v2249_v35, %v553_v46  ;;  %vm564_vm1 = vmand %vm528_vm14, %vm557_vm13  ;;  %v2703_v16 = vsel %vm563_vm5, 0.0, %v548_v42  ;;  %v576_v53 = vsub.f32 %v2464_v56, %v2695_v12 }
  0x98   : > { %v2710_v26 = vsel %vm2665_vm7, 0.0, %v2453_v54  ;;  %vm565_vm3 = vmand %vm529_vm8, %vm558_vm15  ;;  %v2717_v27 = vsel %vm564_vm1, 0.0, %v549_v40  ;;  %v577_v28 = vsub.f32 %v2470_v57, %v2703_v16  ;;  %v582_v44 = vmul.f32 %v575_v13, %v575_v13 }
  0x99   : > { %vm566_vm14 = vmand %vm530_vm4, %vm559_vm6  ;;  %v2724_v45 = vsel %vm565_vm3, 0.0, %v550_v52  ;;  %v578_v54 = vsub.f32 %v2559_v58, %v2717_v27  ;;  %v583_v37 = vmul.f32 %v576_v53, %v576_v53  ;;  %vm597_vm5 = vcmp.ge.s32.totalorder %v2231_v29, %v596_v50 }
  0x9a   : > { %vm3698_vm8 = vcmp.ge.s32.totalorder %v2249_v35, %v2617_v36  ;;  %v2732_v46 = vsel %vm566_vm14, 0.0, %v551_v11  ;;  %v579_v47 = vsub.f32 %v2593_v4, %v2724_v45  ;;  %v584_v48 = vmul.f32 %v577_v28, %v577_v28 }
  0x9b   : > { %vm567_vm7 = vmand %vm3698_vm8, %vm560_vm12  ;;  %vm598_vm4 = vcmp.ge.s32.totalorder %v2234_v30, %v596_v50  ;;  %v580_v38 = vsub.f32 %v2599_v8, %v2732_v46  ;;  %v585_v60 = vmul.f32 %v578_v54, %v578_v54  ;;  %v589_v61 = vadd.f32 %v583_v37, %v582_v44 }
  0x9c   : > { %v2737_v59 = vsel %vm567_vm7, 0.0, %v552_v15  ;;  %vm599_vm10 = vcmp.ge.s32.totalorder %v2237_v31, %v596_v50  ;;  %vm600_vm0 = vcmp.ge.s32.totalorder %v2240_v32, %v596_v50  ;;  %v586_v62 = vmul.f32 %v579_v47, %v579_v47 }
  0x9d   : > { %v581_v36 = vsub.f32 %v2710_v26, %v2737_v59  ;;  %v590_v63 = vadd.f32 %v589_v61, %v584_v48  ;;  %vm601_vm9 = vcmp.ge.s32.totalorder %v2243_v33, %v596_v50  ;;  %vm602_vm13 = vcmp.ge.s32.totalorder %v2246_v34, %v596_v50 }
  0x9e   : > { %vm603_vm2 = vcmp.ge.s32.totalorder %v2249_v35, %v596_v50  ;;  %v1757_v51 = vsel %vm597_vm5, 1.0, %v2065_v43  ;;  %v1758_v49 = vsel %vm598_vm4, 1.0, %v2065_v43  ;;  %v625_v0 = vstv %s2115_s3 }
  0x9f   : > { %v587_v1 = vmul.f32 %v580_v38, %v580_v38  ;;  %v591_v2 = vadd.f32 %v590_v63, %v585_v60  ;;  %vm626_vm15 = vcmp.ge.s32.totalorder %v2231_v29, %v625_v0  ;;  %vm627_vm11 = vcmp.ge.s32.totalorder %v2234_v30, %v625_v0 }
  0xa0   : > { %v588_v3 = vmul.f32 %v581_v36, %v581_v36  ;;  %v1759_v5 = vsel %vm599_vm10, 1.0, %v2065_v43  ;;  %v1760_v6 = vsel %vm600_vm0, 1.0, %v2065_v43  ;;  %vm628_vm6 = vcmp.ge.s32.totalorder %v2237_v31, %v625_v0 }
  0xa1   : > { %v592_v7 = vadd.f32 %v591_v2, %v586_v62  ;;  %vm629_vm12 = vcmp.ge.s32.totalorder %v2240_v32, %v625_v0  ;;  %vm630_vm1 = vcmp.ge.s32.totalorder %v2243_v33, %v625_v0  ;;  %vm631_vm3 = vcmp.ge.s32.totalorder %v2246_v34, %v625_v0 }
  0xa2   : > { %v1761_v39 = vsel %vm601_vm9, 1.0, %v2065_v43  ;;  %vm632_vm14 = vcmp.ge.s32.totalorder %v2249_v35, %v625_v0  ;;  %v1764_v9 = vsel %vm626_vm15, 1.0, %v2065_v43  ;;  %v1765_v42 = vsel %vm627_vm11, 1.0, %v2065_v43 }
  0xa3   : > { %v593_v41 = vadd.f32 %v592_v7, %v587_v1  ;;  %v1762_v40 = vsel %vm602_vm13, 1.0, %v2065_v43  ;;  %v1766_v52 = vsel %vm628_vm6, 1.0, %v2065_v43  ;;  %v654_v11 = vstv %s2117_s4 }
  0xa4   : > { %v1763_v13 = vsel %vm603_vm2, 1.0, %v2065_v43  ;;  %v1767_v15 = vsel %vm629_vm12, 1.0, %v2065_v43  ;;  %v1768_v53 = vsel %vm630_vm1, 1.0, %v2065_v43  ;;  %v1769_v28 = vsel %vm631_vm3, 1.0, %v2065_v43 }
  0xa5   : > { %v594_v44 = vadd.f32 %v593_v41, %v588_v3  ;;  %v1770_v54 = vsel %vm632_vm14, 1.0, %v2065_v43  ;;  %v647_v37 = vadd.f32 %v1764_v9, %v1757_v51  ;;  %v648_v47 = vadd.f32 %v1765_v42, %v1758_v49 }
  0xa6   : > { %v649_v48 = vadd.f32 %v1766_v52, %v1759_v5  ;;  %vm655_vm5 = vcmp.ge.s32.totalorder %v2231_v29, %v654_v11  ;;  %vm656_vm8 = vcmp.ge.s32.totalorder %v2234_v30, %v654_v11  ;;  %vm657_vm7 = vcmp.ge.s32.totalorder %v2237_v31, %v654_v11 }
  0xa7   : > { %v2783_v25 = vadd.f32 %v2057_v25, %v594_v44   ;;  %vm658_vm4 = vcmp.ge.s32.totalorder %v2240_v32, %v654_v11  ;;  %vm659_vm10 = vcmp.ge.s32.totalorder %v2243_v33, %v654_v11  ;;  %vm660_vm0 = vcmp.ge.s32.totalorder %v2246_v34, %v654_v11 }
  0xa8   : > { %v650_v38 = vadd.f32 %v1767_v15, %v1760_v6  ;;  %v651_v60 = vadd.f32 %v1768_v53, %v1761_v39  ;;  %v652_v61 = vadd.f32 %v1769_v28, %v1762_v40  ;;  %vm661_vm9 = vcmp.ge.s32.totalorder %v2249_v35, %v654_v11 }
  0xa9   : > { %v3699_v50 = vmov %v2783_v25  ;;  %v653_v36 = vadd.f32 %v1770_v54, %v1763_v13  ;;  %v1771_v62 = vsel %vm655_vm5, 1.0, %v2065_v43  ;;  %v1772_v63 = vsel %vm656_vm8, 1.0, %v2065_v43 }
  0xaa   : > { %v1773_v51 = vsel %vm657_vm7, 1.0, %v2065_v43  ;;  %v1774_v25 = vsel %vm658_vm4, 1.0, %v2065_v43  ;;  %v1775_v49 = vsel %vm659_vm10, 1.0, %v2065_v43  ;;  %v1776_v0 = vsel %vm660_vm0, 1.0, %v2065_v43 }
  0xab   : > { %v683_v1 = vstv %s2119_s5  ;;  %v1777_v2 = vsel %vm661_vm9, 1.0, %v2065_v43  ;;  %v676_v3 = vadd.f32 %v1771_v62, %v647_v37  ;;  %v677_v5 = vadd.f32 %v1772_v63, %v648_v47 }
  0xac   : > { %vm684_vm13 = vcmp.ge.s32.totalorder %v2231_v29, %v683_v1  ;;  %vm685_vm2 = vcmp.ge.s32.totalorder %v2234_v30, %v683_v1  ;;  %vm686_vm15 = vcmp.ge.s32.totalorder %v2237_v31, %v683_v1  ;;  %vm687_vm11 = vcmp.ge.s32.totalorder %v2240_v32, %v683_v1 }
  0xad   : > { %vm688_vm6 = vcmp.ge.s32.totalorder %v2243_v33, %v683_v1  ;;  %v678_v6 = vadd.f32 %v1773_v51, %v649_v48  ;;  %vm689_vm12 = vcmp.ge.s32.totalorder %v2246_v34, %v683_v1  ;;  %vm690_vm1 = vcmp.ge.s32.totalorder %v2249_v35, %v683_v1 }
  0xae   : > { %v1778_v7 = vsel %vm684_vm13, 1.0, %v2065_v43  ;;  %v679_v39 = vadd.f32 %v1774_v25, %v650_v38  ;;  %v680_v9 = vadd.f32 %v1775_v49, %v651_v60  ;;  %v1779_v42 = vsel %vm685_vm2, 1.0, %v2065_v43 }
  0xaf   : > { %v1780_v41 = vsel %vm686_vm15, 1.0, %v2065_v43  ;;  %v681_v40 = vadd.f32 %v1776_v0, %v652_v61  ;;  %v682_v52 = vadd.f32 %v1777_v2, %v653_v36  ;;  %v1781_v11 = vsel %vm687_vm11, 1.0, %v2065_v43 }
  0xb0   : > { %v1782_v13 = vsel %vm688_vm6, 1.0, %v2065_v43  ;;  %v1783_v15 = vsel %vm689_vm12, 1.0, %v2065_v43  ;;  %v1784_v53 = vsel %vm690_vm1, 1.0, %v2065_v43  ;;  %v705_v28 = vadd.f32 %v1778_v7, %v676_v3 }
  0xb1   : > { %v712_v44 = vstv %s3700_s12  ;;  %v706_v54 = vadd.f32 %v1779_v42, %v677_v5  ;;  %v707_v37 = vadd.f32 %v1780_v41, %v678_v6  ;;  %v708_v47 = vadd.f32 %v1781_v11, %v679_v39  ;;  %s3705_s12 = sld [smem:[#allocation32_spill]] }
  0xb2   : > { %vm713_vm3 = vcmp.ge.s32.totalorder %v2231_v29, %v712_v44  ;;  %vm714_vm14 = vcmp.ge.s32.totalorder %v2234_v30, %v712_v44  ;;  %vm715_vm5 = vcmp.ge.s32.totalorder %v2237_v31, %v712_v44  ;;  %vm716_vm8 = vcmp.ge.s32.totalorder %v2240_v32, %v712_v44 }
  0xb3   : > { %vm717_vm7 = vcmp.ge.s32.totalorder %v2243_v33, %v712_v44  ;;  %v709_v48 = vadd.f32 %v1782_v13, %v680_v9  ;;  %vm718_vm4 = vcmp.ge.s32.totalorder %v2246_v34, %v712_v44  ;;  %vm719_vm10 = vcmp.ge.s32.totalorder %v2249_v35, %v712_v44 }
  0xb4   : > { %v741_v38 = vstv %s3701_s0  ;;  %v710_v60 = vadd.f32 %v1783_v15, %v681_v40  ;;  %v711_v61 = vadd.f32 %v1784_v53, %v682_v52  ;;  %v1785_v36 = vsel %vm713_vm3, 1.0, %v2065_v43  ;;  %s3703_s0 = sld [smem:[#allocation18_spill]] }
  0xb5   : > { %v1786_v62 = vsel %vm714_vm14, 1.0, %v2065_v43  ;;  %v1787_v63 = vsel %vm715_vm5, 1.0, %v2065_v43  ;;  %v1788_v51 = vsel %vm716_vm8, 1.0, %v2065_v43  ;;  %v1789_v25 = vsel %vm717_vm7, 1.0, %v2065_v43 }
  0xb6   : > { %v2826_v49 = vstv %s3702_s1  ;;  %v1790_v0 = vsel %vm718_vm4, 1.0, %v2065_v43  ;;  %v1791_v1 = vsel %vm719_vm10, 1.0, %v2065_v43  ;;  %vm742_vm0 = vcmp.ge.s32.totalorder %v2231_v29, %v741_v38  ;;  %s3704_s1 = sld [smem:[#allocation31_spill]] }
  0xb7   : > { %vm743_vm9 = vcmp.ge.s32.totalorder %v2234_v30, %v741_v38  ;;  %v734_v2 = vadd.f32 %v1785_v36, %v705_v28  ;;  %v735_v3 = vadd.f32 %v1786_v62, %v706_v54  ;;  %vm744_vm13 = vcmp.ge.s32.totalorder %v2237_v31, %v741_v38 }
  0xb8   : > { %vm745_vm2 = vcmp.ge.s32.totalorder %v2240_v32, %v741_v38  ;;  %vm746_vm15 = vcmp.ge.s32.totalorder %v2243_v33, %v741_v38  ;;  %vm747_vm11 = vcmp.ge.s32.totalorder %v2246_v34, %v741_v38  ;;  %vm748_vm6 = vcmp.ge.s32.totalorder %v2249_v35, %v741_v38 }
  0xb9   : > { %v1792_v5 = vsel %vm742_vm0, 1.0, %v2065_v43  ;;  %v736_v6 = vadd.f32 %v1787_v63, %v707_v37  ;;  %v737_v7 = vadd.f32 %v1788_v51, %v708_v47  ;;  %v738_v39 = vadd.f32 %v1789_v25, %v709_v48 }
  0xba   : > { %v1793_v9 = vsel %vm743_vm9, 1.0, %v2065_v43  ;;  %v739_v42 = vadd.f32 %v1790_v0, %v710_v60  ;;  %v740_v41 = vadd.f32 %v1791_v1, %v711_v61  ;;  %v1794_v40 = vsel %vm744_vm13, 1.0, %v2065_v43 }
  0xbb   : > { %v1795_v52 = vsel %vm745_vm2, 1.0, %v2065_v43  ;;  %v1796_v11 = vsel %vm746_vm15, 1.0, %v2065_v43  ;;  %v1797_v13 = vsel %vm747_vm11, 1.0, %v2065_v43  ;;  %v1798_v15 = vsel %vm748_vm6, 1.0, %v2065_v43 }
  0xbc   : > { %v763_v53 = vadd.f32 %v1792_v5, %v734_v2  ;;  %v764_v28 = vadd.f32 %v1793_v9, %v735_v3  ;;  %vm771_vm12 = vcmp.ge.s32.totalorder %v2231_v29, %v2826_v49  ;;  %vm772_vm1 = vcmp.ge.s32.totalorder %v2234_v30, %v2826_v49 }
  0xbd   : > { %vm773_vm3 = vcmp.ge.s32.totalorder %v2237_v31, %v2826_v49  ;;  %v765_v44 = vadd.f32 %v1794_v40, %v736_v6  ;;  %vm774_vm14 = vcmp.ge.s32.totalorder %v2240_v32, %v2826_v49  ;;  %vm775_vm5 = vcmp.ge.s32.totalorder %v2243_v33, %v2826_v49 }
  0xbe   : > { %vm776_vm8 = vcmp.ge.s32.totalorder %v2246_v34, %v2826_v49  ;;  %v766_v54 = vadd.f32 %v1795_v52, %v737_v7  ;;  %v767_v37 = vadd.f32 %v1796_v11, %v738_v39  ;;  %v768_v47 = vadd.f32 %v1797_v13, %v739_v42 }
  0xbf   : > { %vm777_vm7 = vcmp.ge.s32.totalorder %v2249_v35, %v2826_v49  ;;  %v769_v48 = vadd.f32 %v1798_v15, %v740_v41  ;;  %v1799_v38 = vsel %vm771_vm12, 1.0, %v2065_v43  ;;  %v1800_v60 = vsel %vm772_vm1, 1.0, %v2065_v43 }
  0xc0   : > { %v1801_v61 = vsel %vm773_vm3, 1.0, %v2065_v43  ;;  %v1802_v36 = vsel %vm774_vm14, 1.0, %v2065_v43  ;;  %v1803_v62 = vsel %vm775_vm5, 1.0, %v2065_v43  ;;  %v1804_v63 = vsel %vm776_vm8, 1.0, %v2065_v43 }
  0xc1   : > { %v2883_v51 = vstv %s3703_s0  ;;  %v1805_v25 = vsel %vm777_vm7, 1.0, %v2065_v43  ;;  %v792_v0 = vadd.f32 %v1799_v38, %v763_v53  ;;  %v793_v1 = vadd.f32 %v1800_v60, %v764_v28  ;;  %s3706_s0 = sld [smem:[#allocation33_spill]] }
  0xc2   : > { %vm800_vm4 = vcmp.lt.s32.totalorder %v2231_v29, %v2883_v51  ;;  %vm801_vm10 = vcmp.lt.s32.totalorder %v2234_v30, %v2883_v51  ;;  %vm802_vm0 = vcmp.lt.s32.totalorder %v2237_v31, %v2883_v51  ;;  %vm803_vm9 = vcmp.lt.s32.totalorder %v2240_v32, %v2883_v51 }
  0xc3   : > { %vm807_vm13 = vmand %vm771_vm12, %vm800_vm4  ;;  %v821_v2 = vstv %s3704_s1  ;;  %v794_v3 = vadd.f32 %v1801_v61, %v765_v44  ;;  %v795_v5 = vadd.f32 %v1802_v36, %v766_v54  ;;  %v796_v6 = vadd.f32 %v1803_v62, %v767_v37  ;;  %s3707_s1 = sld [smem:[#allocation34_spill]] }
  0xc4   : > { %vm808_vm2 = vmand %vm772_vm1, %vm801_vm10  ;;  %v2904_v7 = vadd.f32 %v1804_v63, %v768_v47  ;;  %v2909_v39 = vadd.f32 %v1805_v25, %v769_v48  ;;  %vm804_vm11 = vcmp.lt.s32.totalorder %v2243_v33, %v2883_v51  ;;  %vm822_vm12 = vcmp.ge.s32.totalorder %v2231_v29, %v821_v2 }
  0xc5   : > { %vm809_vm15 = vmand %vm773_vm3, %vm802_vm0  ;;  %vm823_vm1 = vcmp.ge.s32.totalorder %v2234_v30, %v821_v2  ;;  %v2919_v9 = vsel %vm807_vm13, %v2462_v55, %v792_v0  ;;  %v2922_v42 = vsel %vm808_vm2, %v2464_v56, %v793_v1  ;;  %vm824_vm3 = vcmp.ge.s32.totalorder %v2237_v31, %v821_v2 }
  0xc6   : > { %vm810_vm6 = vmand %vm774_vm14, %vm803_vm9  ;;  %vm825_vm4 = vcmp.ge.s32.totalorder %v2240_v32, %v821_v2  ;;  %v2927_v41 = vsel %vm809_vm15, %v2470_v57, %v794_v3  ;;  %vm826_vm10 = vcmp.ge.s32.totalorder %v2243_v33, %v821_v2  ;;  %vm827_vm14 = vcmp.ge.s32.totalorder %v2246_v34, %v821_v2 }
  0xc7   : > { %v850_v40 = vstv %s3705_s12  ;;  %vm811_vm0 = vmand %vm775_vm5, %vm804_vm11  ;;  %v2936_v55 = vsel %vm810_vm6, %v2559_v58, %v795_v5  ;;  %vm828_vm9 = vcmp.ge.s32.totalorder %v2249_v35, %v821_v2  ;;  %v1806_v56 = vsel %vm822_vm12, 1.0, %v2065_v43  ;;  %s3708_s12 = sld [smem:[#allocation35_spill]] }
  0xc8   : > { %v1807_v52 = vsel %vm823_vm1, 1.0, %v2065_v43  ;;  %v1808_v57 = vsel %vm824_vm3, 1.0, %v2065_v43  ;;  %vm851_vm13 = vcmp.ge.s32.totalorder %v2231_v29, %v850_v40  ;;  %vm852_vm2 = vcmp.ge.s32.totalorder %v2234_v30, %v850_v40 }
  0xc9   : > { %vm853_vm15 = vcmp.ge.s32.totalorder %v2237_v31, %v850_v40  ;;  %v1809_v11 = vsel %vm825_vm4, 1.0, %v2065_v43  ;;  %vm854_vm5 = vcmp.ge.s32.totalorder %v2240_v32, %v850_v40  ;;  %vm855_vm11 = vcmp.ge.s32.totalorder %v2243_v33, %v850_v40 }
  0xca   : > { %vm856_vm6 = vcmp.ge.s32.totalorder %v2246_v34, %v850_v40  ;;  %v2950_v58 = vsel %vm811_vm0, %v2593_v4, %v796_v6  ;;  %v1810_v13 = vsel %vm826_vm10, 1.0, %v2065_v43  ;;  %v1811_v15 = vsel %vm827_vm14, 1.0, %v2065_v43 }
  0xcb   : > { %vm857_vm12 = vcmp.ge.s32.totalorder %v2249_v35, %v850_v40  ;;  %v1812_v53 = vsel %vm828_vm9, 1.0, %v2065_v43  ;;  %v1813_v28 = vsel %vm851_vm13, 1.0, %v2065_v43  ;;  %v1814_v44 = vsel %vm852_vm2, 1.0, %v2065_v43 }
  0xcc   : > { %v1815_v54 = vsel %vm853_vm15, 1.0, %v2065_v43  ;;  %v1816_v4 = vsel %vm854_vm5, 1.0, %v2065_v43  ;;  %v1817_v37 = vsel %vm855_vm11, 1.0, %v2065_v43  ;;  %v1818_v47 = vsel %vm856_vm6, 1.0, %v2065_v43 }
  0xcd   : > { %v879_v48 = vstv %s3706_s0  ;;  %v1819_v38 = vsel %vm857_vm12, 1.0, %v2065_v43  ;;  %v872_v60 = vadd.f32 %v1813_v28, %v1806_v56  ;;  %v873_v61 = vadd.f32 %v1814_v44, %v1807_v52  ;;  %s3711_s0 = sld [smem:[#allocation21_spill]] }
  0xce   : > { %vm880_vm1 = vcmp.ge.s32.totalorder %v2231_v29, %v879_v48  ;;  %vm881_vm3 = vcmp.ge.s32.totalorder %v2234_v30, %v879_v48  ;;  %vm882_vm4 = vcmp.ge.s32.totalorder %v2237_v31, %v879_v48  ;;  %vm883_vm10 = vcmp.ge.s32.totalorder %v2240_v32, %v879_v48 }
  0xcf   : > { %vm884_vm14 = vcmp.ge.s32.totalorder %v2243_v33, %v879_v48  ;;  %v874_v36 = vadd.f32 %v1815_v54, %v1808_v57  ;;  %vm885_vm0 = vcmp.ge.s32.totalorder %v2246_v34, %v879_v48  ;;  %vm886_vm9 = vcmp.ge.s32.totalorder %v2249_v35, %v879_v48 }
  0xd0   : > { %v1820_v62 = vsel %vm880_vm1, 1.0, %v2065_v43  ;;  %v875_v63 = vadd.f32 %v1816_v4, %v1809_v11  ;;  %v876_v25 = vadd.f32 %v1817_v37, %v1810_v13  ;;  %v1821_v0 = vsel %vm881_vm3, 1.0, %v2065_v43 }
  0xd1   : > { %v1822_v1 = vsel %vm882_vm4, 1.0, %v2065_v43  ;;  %v877_v2 = vadd.f32 %v1818_v47, %v1811_v15  ;;  %v878_v3 = vadd.f32 %v1819_v38, %v1812_v53  ;;  %v1823_v5 = vsel %vm883_vm10, 1.0, %v2065_v43 }
  0xd2   : > { %v1824_v6 = vsel %vm884_vm14, 1.0, %v2065_v43  ;;  %v1825_v40 = vsel %vm885_vm0, 1.0, %v2065_v43  ;;  %v1826_v56 = vsel %vm886_vm9, 1.0, %v2065_v43  ;;  %v901_v52 = vadd.f32 %v1820_v62, %v872_v60 }
  0xd3   : > { %v908_v57 = vstv %s3707_s1  ;;  %v902_v28 = vadd.f32 %v1821_v0, %v873_v61  ;;  %v903_v11 = vadd.f32 %v1822_v1, %v874_v36  ;;  %v904_v13 = vadd.f32 %v1823_v5, %v875_v63  ;;  %s3712_s1 = sld [smem:[#allocation22_spill]] }
  0xd4   : > { %vm909_vm13 = vcmp.ge.s32.totalorder %v2231_v29, %v908_v57  ;;  %vm910_vm2 = vcmp.ge.s32.totalorder %v2234_v30, %v908_v57  ;;  %vm911_vm15 = vcmp.ge.s32.totalorder %v2237_v31, %v908_v57  ;;  %vm912_vm5 = vcmp.ge.s32.totalorder %v2240_v32, %v908_v57 }
  0xd5   : > { %vm913_vm11 = vcmp.ge.s32.totalorder %v2243_v33, %v908_v57  ;;  %v905_v15 = vadd.f32 %v1824_v6, %v876_v25  ;;  %vm914_vm6 = vcmp.ge.s32.totalorder %v2246_v34, %v908_v57  ;;  %vm915_vm12 = vcmp.ge.s32.totalorder %v2249_v35, %v908_v57 }
  0xd6   : > { %v937_v53 = vstv %s3708_s12  ;;  %v906_v44 = vadd.f32 %v1825_v40, %v877_v2  ;;  %v907_v54 = vadd.f32 %v1826_v56, %v878_v3  ;;  %v1827_v4 = vsel %vm909_vm13, 1.0, %v2065_v43  ;;  %s3714_s12 = sld [smem:[#allocation23_spill]] }
  0xd7   : > { %v1828_v37 = vsel %vm910_vm2, 1.0, %v2065_v43  ;;  %v1829_v47 = vsel %vm911_vm15, 1.0, %v2065_v43  ;;  %v1830_v48 = vsel %vm912_vm5, 1.0, %v2065_v43  ;;  %v1831_v38 = vsel %vm913_vm11, 1.0, %v2065_v43 }
  0xd8   : > { %v966_v60 = vstv %s2185_s11  ;;  %v1832_v61 = vsel %vm914_vm6, 1.0, %v2065_v43  ;;  %v1833_v36 = vsel %vm915_vm12, 1.0, %v2065_v43  ;;  %vm938_vm1 = vcmp.ge.s32.totalorder %v2231_v29, %v937_v53 }
  0xd9   : > { %vm939_vm3 = vcmp.ge.s32.totalorder %v2234_v30, %v937_v53  ;;  %v930_v62 = vadd.f32 %v1827_v4, %v901_v52  ;;  %v931_v63 = vadd.f32 %v1828_v37, %v902_v28  ;;  %vm940_vm4 = vcmp.ge.s32.totalorder %v2237_v31, %v937_v53 }
  0xda   : > { %vm941_vm10 = vcmp.ge.s32.totalorder %v2240_v32, %v937_v53  ;;  %v932_v25 = vadd.f32 %v1829_v47, %v903_v11  ;;  %vm942_vm14 = vcmp.ge.s32.totalorder %v2243_v33, %v937_v53  ;;  %vm943_vm0 = vcmp.ge.s32.totalorder %v2246_v34, %v937_v53 }
  0xdb   : > { %vm944_vm9 = vcmp.ge.s32.totalorder %v2249_v35, %v937_v53  ;;  %v933_v0 = vadd.f32 %v1830_v48, %v904_v13  ;;  %v934_v1 = vadd.f32 %v1831_v38, %v905_v15  ;;  %v1834_v2 = vsel %vm938_vm1, 1.0, %v2065_v43 }
  0xdc   : > { %v1835_v3 = vsel %vm939_vm3, 1.0, %v2065_v43  ;;  %vm805_vm13 = vcmp.lt.s32.totalorder %v2246_v34, %v2883_v51  ;;  %v935_v5 = vadd.f32 %v1832_v61, %v906_v44  ;;  %v936_v6 = vadd.f32 %v1833_v36, %v907_v54 }
  0xdd   : > { %v1836_v40 = vsel %vm940_vm4, 1.0, %v2065_v43  ;;  %v1837_v56 = vsel %vm941_vm10, 1.0, %v2065_v43  ;;  %v1838_v52 = vsel %vm942_vm14, 1.0, %v2065_v43  ;;  %v1839_v57 = vsel %vm943_vm0, 1.0, %v2065_v43 }
  0xde   : > { %v1840_v28 = vsel %vm944_vm9, 1.0, %v2065_v43  ;;  %vm967_vm2 = vcmp.ge.s32.totalorder %v2231_v29, %v966_v60  ;;  %vm806_vm15 = vcmp.lt.s32.totalorder %v2249_v35, %v2883_v51  ;;  %v959_v11 = vadd.f32 %v1834_v2, %v930_v62 }
  0xdf   : > { %v960_v13 = vadd.f32 %v1835_v3, %v931_v63  ;;  %vm968_vm5 = vcmp.ge.s32.totalorder %v2234_v30, %v966_v60  ;;  %vm969_vm11 = vcmp.ge.s32.totalorder %v2237_v31, %v966_v60  ;;  %v961_v15 = vadd.f32 %v1836_v40, %v932_v25 }
  0xe0   : > { %vm970_vm6 = vcmp.ge.s32.totalorder %v2240_v32, %v966_v60  ;;  %vm971_vm12 = vcmp.ge.s32.totalorder %v2243_v33, %v966_v60  ;;  %vm972_vm1 = vcmp.ge.s32.totalorder %v2246_v34, %v966_v60  ;;  %v962_v53 = vadd.f32 %v1837_v56, %v933_v0 }
  0xe1   : > { %v963_v44 = vadd.f32 %v1838_v52, %v934_v1  ;;  %v964_v54 = vadd.f32 %v1839_v57, %v935_v5  ;;  %v1841_v4 = vsel %vm967_vm2, 1.0, %v2065_v43  ;;  %v965_v37 = vadd.f32 %v1840_v28, %v936_v6 }
  0xe2   : > { %vm973_vm3 = vcmp.ge.s32.totalorder %v2249_v35, %v966_v60  ;;  %v1842_v47 = vsel %vm968_vm5, 1.0, %v2065_v43  ;;  %v1843_v48 = vsel %vm969_vm11, 1.0, %v2065_v43  ;;  %v1844_v38 = vsel %vm970_vm6, 1.0, %v2065_v43  ;;  %vm812_vm5 = vmand %vm776_vm8, %vm805_vm13 }
  0xe3   : > { %v1845_v61 = vsel %vm971_vm12, 1.0, %v2065_v43  ;;  %v1846_v36 = vsel %vm972_vm1, 1.0, %v2065_v43  ;;  %v995_v62 = vstv %s2187_s10  ;;  %v988_v63 = vadd.f32 %v1841_v4, %v959_v11  ;;  %vm3070_vm8 = vmand %vm777_vm7, %vm806_vm15 }
  0xe4   : > { %vm996_vm4 = vcmp.ge.s32.totalorder %v2231_v29, %v995_v62  ;;  %vm997_vm10 = vcmp.ge.s32.totalorder %v2234_v30, %v995_v62  ;;  %vm998_vm14 = vcmp.ge.s32.totalorder %v2237_v31, %v995_v62  ;;  %v1847_v60 = vsel %vm973_vm3, 1.0, %v2065_v43 }
  0xe5   : > { %v989_v25 = vadd.f32 %v1842_v47, %v960_v13  ;;  %vm999_vm0 = vcmp.ge.s32.totalorder %v2240_v32, %v995_v62  ;;  %v1848_v0 = vsel %vm996_vm4, 1.0, %v2065_v43  ;;  %v990_v1 = vadd.f32 %v1843_v48, %v961_v15 }
  0xe6   : > { %vm1000_vm9 = vcmp.ge.s32.totalorder %v2243_v33, %v995_v62  ;;  %vm1001_vm2 = vcmp.ge.s32.totalorder %v2246_v34, %v995_v62  ;;  %v1849_v2 = vsel %vm997_vm10, 1.0, %v2065_v43  ;;  %v991_v3 = vadd.f32 %v1844_v38, %v962_v53 }
  0xe7   : > { %v992_v5 = vadd.f32 %v1845_v61, %v963_v44  ;;  %v993_v6 = vadd.f32 %v1846_v36, %v964_v54  ;;  %v1850_v40 = vsel %vm998_vm14, 1.0, %v2065_v43  ;;  %v994_v56 = vadd.f32 %v1847_v60, %v965_v37 }
  0xe8   : > { %vm3647_vm11 = vcmp.ge.s32.totalorder %v2249_v35, %v995_v62  ;;  %v1851_v52 = vsel %vm999_vm0, 1.0, %v2065_v43  ;;  %v1017_v57 = vadd.f32 %v1848_v0, %v988_v63  ;;  %v1852_v28 = vsel %vm1000_vm9, 1.0, %v2065_v43 }
  0xe9   : > { %v1853_v11 = vsel %vm1001_vm2, 1.0, %v2065_v43  ;;  %v1018_v13 = vadd.f32 %v1849_v2, %v989_v25  ;;  %v1024_v15 = vstv %s2189_s9  ;;  %v1019_v44 = vadd.f32 %v1850_v40, %v990_v1 }
  0xea   : > { %vm1025_vm13 = vcmp.lt.s32.totalorder %v2231_v29, %v1024_v15  ;;  %vm1026_vm6 = vcmp.lt.s32.totalorder %v2234_v30, %v1024_v15  ;;  %vm1027_vm12 = vcmp.lt.s32.totalorder %v2237_v31, %v1024_v15  ;;  %v3079_v54 = vsel %vm812_vm5, %v2599_v8, %v2904_v7 }
  0xeb   : > { %v1854_v49 = vsel %vm3647_vm11, 1.0, %v2065_v43  ;;  %v1020_v51 = vadd.f32 %v1851_v52, %v991_v3  ;;  %vm1028_vm7 = vcmp.lt.s32.totalorder %v2240_v32, %v1024_v15  ;;  %vm1032_vm15 = vmand %vm996_vm4, %vm1025_vm13  ;;  %v1021_v4 = vadd.f32 %v1852_v28, %v992_v5 }
  0xec   : > { %v1022_v37 = vadd.f32 %v1853_v11, %v993_v6  ;;  %vm1029_vm1 = vcmp.lt.s32.totalorder %v2243_v33, %v1024_v15  ;;  %vm1033_vm3 = vmand %vm997_vm10, %vm1026_vm6  ;;  %v3091_v8 = vsel %vm1032_vm15, %v2688_v10, %v1017_v57  ;;  %vm1030_vm5 = vcmp.lt.s32.totalorder %v2246_v34, %v1024_v15 }
  0xed   : > { %vm1034_vm11 = vmand %vm998_vm14, %vm1027_vm12  ;;  %v3097_v7 = vsel %vm1033_vm3, %v2695_v12, %v1018_v13  ;;  %v1046_v47 = vsub.f32 %v2919_v9, %v3091_v8  ;;  %v1067_v48 = vstv %s3711_s0  ;;  %v1023_v38 = vadd.f32 %v1854_v49, %v994_v56  ;;  %s3715_s0 = sld [smem:[#allocation24_spill]] }
  0xee   : > { %vm1031_vm4 = vcmp.lt.s32.totalorder %v2249_v35, %v1024_v15  ;;  %vm1035_vm10 = vmand %vm999_vm0, %vm1028_vm7  ;;  %v3106_v10 = vsel %vm1034_vm11, %v2703_v16, %v1019_v44  ;;  %v1047_v61 = vsub.f32 %v2922_v42, %v3097_v7  ;;  %v3114_v12 = vsel %vm3070_vm8, %v2710_v26, %v2909_v39 }
  0xef   : > { %vm1036_vm14 = vmand %vm1000_vm9, %vm1029_vm1  ;;  %v3119_v36 = vsel %vm1035_vm10, %v2717_v27, %v1020_v51  ;;  %v1048_v63 = vsub.f32 %v2927_v41, %v3106_v10  ;;  %v1053_v16 = vmul.f32 %v1046_v47, %v1046_v47  ;;  %vm1068_vm9 = vcmp.ge.s32.totalorder %v2231_v29, %v1067_v48 }
  0xf0   : > { %vm1037_vm0 = vmand %vm1001_vm2, %vm1030_vm5  ;;  %v3128_v60 = vsel %vm1036_vm14, %v2724_v45, %v1021_v4  ;;  %v1049_v26 = vsub.f32 %v2936_v55, %v3119_v36  ;;  %v1054_v39 = vmul.f32 %v1047_v61, %v1047_v61  ;;  %vm3713_vm11 = vcmp.ge.s32.totalorder %v2249_v35, %v995_v62 }
  0xf1   : > { %vm1038_vm8 = vmand %vm3713_vm11, %vm1031_vm4  ;;  %v3136_v27 = vsel %vm1037_vm0, %v2732_v46, %v1022_v37  ;;  %v1050_v25 = vsub.f32 %v2950_v58, %v3128_v60  ;;  %v1055_v0 = vmul.f32 %v1048_v63, %v1048_v63  ;;  %vm1069_vm2 = vcmp.ge.s32.totalorder %v2234_v30, %v1067_v48 }
  0xf2   : > { %v3142_v45 = vsel %vm1038_vm8, %v2737_v59, %v1023_v38  ;;  %v1051_v1 = vsub.f32 %v3079_v54, %v3136_v27  ;;  %v1056_v2 = vmul.f32 %v1049_v26, %v1049_v26  ;;  %v1060_v3 = vadd.f32 %v1054_v39, %v1053_v16 }
  0xf3   : > { %vm1070_vm13 = vcmp.ge.s32.totalorder %v2237_v31, %v1067_v48  ;;  %vm1071_vm6 = vcmp.ge.s32.totalorder %v2240_v32, %v1067_v48  ;;  %vm1072_vm12 = vcmp.ge.s32.totalorder %v2243_v33, %v1067_v48  ;;  %v1096_v46 = vstv %s3712_s1  ;;  %s3716_s1 = sld [smem:[#allocation25_spill]] }
  0xf4   : > { %v1052_v62 = vsub.f32 %v3114_v12, %v3142_v45  ;;  %v1057_v5 = vmul.f32 %v1050_v25, %v1050_v25  ;;  %v1061_v6 = vadd.f32 %v1060_v3, %v1055_v0  ;;  %vm1073_vm7 = vcmp.ge.s32.totalorder %v2246_v34, %v1067_v48 }
  0xf5   : > { %v1058_v59 = vmul.f32 %v1051_v1, %v1051_v1  ;;  %vm1074_vm15 = vcmp.ge.s32.totalorder %v2249_v35, %v1067_v48  ;;  %v1855_v40 = vsel %vm1068_vm9, 1.0, %v2065_v43  ;;  %v1856_v56 = vsel %vm1069_vm2, 1.0, %v2065_v43 }
  0xf6   : > { %v1062_v52 = vadd.f32 %v1061_v6, %v1056_v2  ;;  %vm1097_vm1 = vcmp.ge.s32.totalorder %v2231_v29, %v1096_v46  ;;  %vm1098_vm3 = vcmp.ge.s32.totalorder %v2234_v30, %v1096_v46  ;;  %vm1099_vm5 = vcmp.ge.s32.totalorder %v2237_v31, %v1096_v46 }
  0xf7   : > { %v1857_v57 = vsel %vm1070_vm13, 1.0, %v2065_v43  ;;  %v1858_v28 = vsel %vm1071_vm6, 1.0, %v2065_v43  ;;  %vm1100_vm4 = vcmp.ge.s32.totalorder %v2240_v32, %v1096_v46  ;;  %vm1101_vm10 = vcmp.ge.s32.totalorder %v2243_v33, %v1096_v46 }
  0xf8   : > { %v1059_v11 = vmul.f32 %v1052_v62, %v1052_v62  ;;  %v1063_v13 = vadd.f32 %v1062_v52, %v1057_v5  ;;  %vm1102_vm14 = vcmp.ge.s32.totalorder %v2246_v34, %v1096_v46  ;;  %vm1103_vm0 = vcmp.ge.s32.totalorder %v2249_v35, %v1096_v46 }
  0xf9   : > { %v1859_v15 = vsel %vm1072_vm12, 1.0, %v2065_v43  ;;  %v1862_v53 = vsel %vm1097_vm1, 1.0, %v2065_v43  ;;  %v1863_v44 = vsel %vm1098_vm3, 1.0, %v2065_v43  ;;  %v1864_v49 = vsel %vm1099_vm5, 1.0, %v2065_v43 }
  0xfa   : > { %v1064_v51 = vadd.f32 %v1063_v13, %v1058_v59  ;;  %v1860_v4 = vsel %vm1073_vm7, 1.0, %v2065_v43  ;;  %v1865_v37 = vsel %vm1100_vm4, 1.0, %v2065_v43  ;;  %v1866_v47 = vsel %vm1101_vm10, 1.0, %v2065_v43 }
  0xfb   : > { %v1861_v38 = vsel %vm1074_vm15, 1.0, %v2065_v43  ;;  %v1867_v61 = vsel %vm1102_vm14, 1.0, %v2065_v43  ;;  %v1868_v63 = vsel %vm1103_vm0, 1.0, %v2065_v43  ;;  %v1125_v16 = vstv %s3714_s12  ;;  %s3720_s12 = sld [smem:[#allocation28_spill]] }
  0xfc   : > { %v1065_v26 = vadd.f32 %v1064_v51, %v1059_v11  ;;  %v1118_v39 = vadd.f32 %v1862_v53, %v1855_v40  ;;  %v1119_v25 = vadd.f32 %v1863_v44, %v1856_v56  ;;  %v1120_v0 = vadd.f32 %v1864_v49, %v1857_v57 }
  0xfd   : > { %v1121_v1 = vadd.f32 %v1865_v37, %v1858_v28  ;;  %v1122_v2 = vadd.f32 %v1866_v47, %v1859_v15  ;;  %vm1126_vm9 = vcmp.ge.s32.totalorder %v2231_v29, %v1125_v16  ;;  %vm1127_vm11 = vcmp.ge.s32.totalorder %v2234_v30, %v1125_v16 }
  0xfe   : > { %v3193_v24 = vadd.f32 %v2053_v24, %v1065_v26   ;;  %vm1128_vm8 = vcmp.ge.s32.totalorder %v2237_v31, %v1125_v16  ;;  %vm1129_vm2 = vcmp.ge.s32.totalorder %v2240_v32, %v1125_v16  ;;  %vm1130_vm13 = vcmp.ge.s32.totalorder %v2243_v33, %v1125_v16 }
  0xff   : > { %v1123_v3 = vadd.f32 %v1867_v61, %v1860_v4  ;;  %vm1131_vm6 = vcmp.ge.s32.totalorder %v2246_v34, %v1125_v16  ;;  %vm1132_vm12 = vcmp.ge.s32.totalorder %v2249_v35, %v1125_v16  ;;  %v1154_v46 = vstv %s3715_s0  ;;  %s3721_s0 = sld [smem:[#allocation36_spill]] }
 0x100   : > { %v3718_v48 = vmov %v3193_v24  ;;  %v1124_v62 = vadd.f32 %v1868_v63, %v1861_v38  ;;  %v1869_v5 = vsel %vm1126_vm9, 1.0, %v2065_v43  ;;  %v1870_v6 = vsel %vm1127_vm11, 1.0, %v2065_v43 }
 0x101   : > { %v1183_v59 = vstv %s3716_s1  ;;  %v1871_v24 = vsel %vm1128_vm8, 1.0, %v2065_v43  ;;  %v1872_v40 = vsel %vm1129_vm2, 1.0, %v2065_v43  ;;  %v1873_v56 = vsel %vm1130_vm13, 1.0, %v2065_v43  ;;  %s3728_s1 = sld [smem:[#allocation37_spill]] }
 0x102   : > { %v3208_v52 = vstv %s3717_s2  ;;  %v1874_v57 = vsel %vm1131_vm6, 1.0, %v2065_v43  ;;  %v1875_v28 = vsel %vm1132_vm12, 1.0, %v2065_v43  ;;  %vm1155_vm7 = vcmp.ge.s32.totalorder %v2231_v29, %v1154_v46  ;;  %s3719_s2 = sld [smem:[#allocation27_spill]] }
 0x103   : > { %vm1156_vm15 = vcmp.ge.s32.totalorder %v2234_v30, %v1154_v46  ;;  %v1147_v11 = vadd.f32 %v1869_v5, %v1118_v39  ;;  %v1148_v13 = vadd.f32 %v1870_v6, %v1119_v25  ;;  %vm1157_vm1 = vcmp.ge.s32.totalorder %v2237_v31, %v1154_v46 }
 0x104   : > { %vm1158_vm3 = vcmp.ge.s32.totalorder %v2240_v32, %v1154_v46  ;;  %v1149_v15 = vadd.f32 %v1871_v24, %v1120_v0  ;;  %vm1159_vm5 = vcmp.ge.s32.totalorder %v2243_v33, %v1154_v46  ;;  %vm1160_vm4 = vcmp.ge.s32.totalorder %v2246_v34, %v1154_v46 }
 0x105   : > { %vm1161_vm10 = vcmp.ge.s32.totalorder %v2249_v35, %v1154_v46  ;;  %v1150_v53 = vadd.f32 %v1872_v40, %v1121_v1  ;;  %v1151_v44 = vadd.f32 %v1873_v56, %v1122_v2  ;;  %v1876_v49 = vsel %vm1155_vm7, 1.0, %v2065_v43 }
 0x106   : > { %v1877_v51 = vsel %vm1156_vm15, 1.0, %v2065_v43  ;;  %v1152_v4 = vadd.f32 %v1874_v57, %v1123_v3  ;;  %v1153_v37 = vadd.f32 %v1875_v28, %v1124_v62  ;;  %v1878_v47 = vsel %vm1157_vm1, 1.0, %v2065_v43 }
 0x107   : > { %v1879_v38 = vsel %vm1158_vm3, 1.0, %v2065_v43  ;;  %v1880_v61 = vsel %vm1159_vm5, 1.0, %v2065_v43  ;;  %v1881_v63 = vsel %vm1160_vm4, 1.0, %v2065_v43  ;;  %v1882_v16 = vsel %vm1161_vm10, 1.0, %v2065_v43 }
 0x108   : > { %vm1184_vm14 = vcmp.ge.s32.totalorder %v2231_v29, %v1183_v59  ;;  %v1176_v26 = vadd.f32 %v1876_v49, %v1147_v11  ;;  %v1177_v39 = vadd.f32 %v1877_v51, %v1148_v13  ;;  %vm1185_vm0 = vcmp.ge.s32.totalorder %v2234_v30, %v1183_v59 }
 0x109   : > { %vm1186_vm9 = vcmp.ge.s32.totalorder %v2237_v31, %v1183_v59  ;;  %v1178_v25 = vadd.f32 %v1878_v47, %v1149_v15  ;;  %vm1187_vm11 = vcmp.ge.s32.totalorder %v2240_v32, %v1183_v59  ;;  %vm1188_vm8 = vcmp.ge.s32.totalorder %v2243_v33, %v1183_v59 }
 0x10a   : > { %vm1189_vm2 = vcmp.ge.s32.totalorder %v2246_v34, %v1183_v59  ;;  %v1179_v0 = vadd.f32 %v1879_v38, %v1150_v53  ;;  %v1180_v1 = vadd.f32 %v1880_v61, %v1151_v44  ;;  %vm1190_vm13 = vcmp.ge.s32.totalorder %v2249_v35, %v1183_v59 }
 0x10b   : > { %v1883_v2 = vsel %vm1184_vm14, 1.0, %v2065_v43  ;;  %v1181_v3 = vadd.f32 %v1881_v63, %v1152_v4  ;;  %v1182_v46 = vadd.f32 %v1882_v16, %v1153_v37  ;;  %v1884_v62 = vsel %vm1185_vm0, 1.0, %v2065_v43 }
 0x10c   : > { %v1885_v5 = vsel %vm1186_vm9, 1.0, %v2065_v43  ;;  %v1886_v6 = vsel %vm1187_vm11, 1.0, %v2065_v43  ;;  %v1887_v24 = vsel %vm1188_vm8, 1.0, %v2065_v43  ;;  %v1888_v40 = vsel %vm1189_vm2, 1.0, %v2065_v43 }
 0x10d   : > { %vm1213_vm6 = vcmp.ge.s32.totalorder %v2231_v29, %v3208_v52  ;;  %v1889_v56 = vsel %vm1190_vm13, 1.0, %v2065_v43  ;;  %v1205_v59 = vadd.f32 %v1883_v2, %v1176_v26  ;;  %vm1214_vm12 = vcmp.ge.s32.totalorder %v2234_v30, %v3208_v52 }
 0x10e   : > { %vm1215_vm7 = vcmp.ge.s32.totalorder %v2237_v31, %v3208_v52  ;;  %v1206_v57 = vadd.f32 %v1884_v62, %v1177_v39  ;;  %v1207_v28 = vadd.f32 %v1885_v5, %v1178_v25  ;;  %vm1216_vm15 = vcmp.ge.s32.totalorder %v2240_v32, %v3208_v52 }
 0x10f   : > { %vm1217_vm1 = vcmp.ge.s32.totalorder %v2243_v33, %v3208_v52  ;;  %v1208_v11 = vadd.f32 %v1886_v6, %v1179_v0  ;;  %vm1218_vm3 = vcmp.ge.s32.totalorder %v2246_v34, %v3208_v52  ;;  %vm1219_vm5 = vcmp.ge.s32.totalorder %v2249_v35, %v3208_v52 }
 0x110   : > { %v1890_v13 = vsel %vm1213_vm6, 1.0, %v2065_v43  ;;  %v1209_v15 = vadd.f32 %v1887_v24, %v1180_v1  ;;  %v1210_v53 = vadd.f32 %v1888_v40, %v1181_v3  ;;  %v1891_v44 = vsel %vm1214_vm12, 1.0, %v2065_v43 }
 0x111   : > { %v1892_v49 = vsel %vm1215_vm7, 1.0, %v2065_v43  ;;  %v1211_v51 = vadd.f32 %v1889_v56, %v1182_v46  ;;  %v1893_v4 = vsel %vm1216_vm15, 1.0, %v2065_v43  ;;  %v1894_v37 = vsel %vm1217_vm1, 1.0, %v2065_v43 }
 0x112   : > { %v3260_v47 = vstv %s3719_s2  ;;  %v1895_v38 = vsel %vm1218_vm3, 1.0, %v2065_v43  ;;  %v1896_v52 = vsel %vm1219_vm5, 1.0, %v2065_v43  ;;  %v1234_v61 = vadd.f32 %v1890_v13, %v1205_v59 }
 0x113   : > { %vm1242_vm4 = vcmp.ge.s32.totalorder %v2231_v29, %v3260_v47  ;;  %v1235_v63 = vadd.f32 %v1891_v44, %v1206_v57  ;;  %v1236_v16 = vadd.f32 %v1892_v49, %v1207_v28  ;;  %vm1243_vm10 = vcmp.ge.s32.totalorder %v2234_v30, %v3260_v47 }
 0x114   : > { %vm1244_vm14 = vcmp.ge.s32.totalorder %v2237_v31, %v3260_v47  ;;  %v1237_v26 = vadd.f32 %v1893_v4, %v1208_v11  ;;  %v1238_v39 = vadd.f32 %v1894_v37, %v1209_v15  ;;  %vm3651_vm0 = vcmp.ge.s32.totalorder %v2240_v32, %v3260_v47 }
 0x115   : > { %v3273_v25 = vstv %s3720_s12  ;;  %vm3650_vm9 = vcmp.ge.s32.totalorder %v2243_v33, %v3260_v47  ;;  %vm3649_vm11 = vcmp.ge.s32.totalorder %v2246_v34, %v3260_v47  ;;  %vm3648_vm8 = vcmp.ge.s32.totalorder %v2249_v35, %v3260_v47 }
 0x116   : > { %v1897_v0 = vsel %vm1242_vm4, 1.0, %v2065_v43  ;;  %v1239_v1 = vadd.f32 %v1895_v38, %v1210_v53  ;;  %v1240_v2 = vadd.f32 %v1896_v52, %v1211_v51  ;;  %v1898_v3 = vsel %vm1243_vm10, 1.0, %v2065_v43 }
 0x117   : > { %v1899_v46 = vsel %vm1244_vm14, 1.0, %v2065_v43  ;;  %v1900_v62 = vsel %vm3651_vm0, 1.0, %v2065_v43  ;;  %vm1271_vm2 = vcmp.lt.s32.totalorder %v2231_v29, %v3273_v25  ;;  %vm1272_vm13 = vcmp.lt.s32.totalorder %v2234_v30, %v3273_v25 }
 0x118   : > { %vm1273_vm6 = vcmp.lt.s32.totalorder %v2237_v31, %v3273_v25  ;;  %v1901_v5 = vsel %vm3650_vm9, 1.0, %v2065_v43  ;;  %v1902_v6 = vsel %vm3649_vm11, 1.0, %v2065_v43  ;;  %v1903_v24 = vsel %vm3648_vm8, 1.0, %v2065_v43  ;;  %vm3320_vm12 = vmand %vm1242_vm4, %vm1271_vm2 }
 0x119   : > { %v3315_v40 = vadd.f32 %v1897_v0, %v1234_v61  ;;  %v3324_v59 = vadd.f32 %v1898_v3, %v1235_v63  ;;  %v3326_v57 = vadd.f32 %v1899_v46, %v1236_v16  ;;  %vm3331_vm7 = vmand %vm1243_vm10, %vm1272_vm13  ;;  %v1292_v11 = vstv %s3721_s0 }
 0x11a   : > { %vm3339_vm15 = vmand %vm1244_vm14, %vm1273_vm6  ;;  %v3343_v15 = vadd.f32 %v1900_v62, %v1237_v26  ;;  %v3345_v53 = vadd.f32 %v1901_v5, %v1238_v39  ;;  %v3347_v44 = vadd.f32 %v1902_v6, %v1239_v1  ;;  %v3349_v49 = vadd.f32 %v1903_v24, %v1240_v2 }
 0x11b   : > { %vm1293_vm1 = vcmp.ge.s32.totalorder %v2231_v29, %v1292_v11  ;;  %vm1294_vm3 = vcmp.ge.s32.totalorder %v2234_v30, %v1292_v11  ;;  %v1321_v4 = vstv %s2193_s7  ;;  %vm1295_vm5 = vcmp.ge.s32.totalorder %v2237_v31, %v1292_v11 }
 0x11c   : > { %v1350_v52 = vstv %s2195_s6  ;;  %vm1296_vm4 = vcmp.ge.s32.totalorder %v2240_v32, %v1292_v11  ;;  %vm1297_vm10 = vcmp.ge.s32.totalorder %v2243_v33, %v1292_v11  ;;  %vm1298_vm14 = vcmp.ge.s32.totalorder %v2246_v34, %v1292_v11 }
 0x11d   : > { %vm1299_vm2 = vcmp.ge.s32.totalorder %v2249_v35, %v1292_v11  ;;  %v1904_v61 = vsel %vm1293_vm1, 1.0, %v2065_v43  ;;  %v1905_v63 = vsel %vm1294_vm3, 1.0, %v2065_v43  ;;  %vm1322_vm13 = vcmp.ge.s32.totalorder %v2231_v29, %v1321_v4 }
 0x11e   : > { %vm1323_vm6 = vcmp.ge.s32.totalorder %v2234_v30, %v1321_v4  ;;  %vm1324_vm8 = vcmp.ge.s32.totalorder %v2237_v31, %v1321_v4  ;;  %vm1325_vm11 = vcmp.ge.s32.totalorder %v2240_v32, %v1321_v4  ;;  %vm1326_vm9 = vcmp.ge.s32.totalorder %v2243_v33, %v1321_v4 }
 0x11f   : > { %vm1327_vm0 = vcmp.ge.s32.totalorder %v2246_v34, %v1321_v4  ;;  %v1906_v16 = vsel %vm1295_vm5, 1.0, %v2065_v43  ;;  %v1907_v26 = vsel %vm1296_vm4, 1.0, %v2065_v43  ;;  %v1908_v39 = vsel %vm1297_vm10, 1.0, %v2065_v43 }
 0x120   : > { %vm1328_vm1 = vcmp.ge.s32.totalorder %v2249_v35, %v1321_v4  ;;  %v1909_v0 = vsel %vm1298_vm14, 1.0, %v2065_v43  ;;  %v1910_v1 = vsel %vm1299_vm2, 1.0, %v2065_v43  ;;  %v1911_v2 = vsel %vm1322_vm13, 1.0, %v2065_v43 }
 0x121   : > { %v1912_v3 = vsel %vm1323_vm6, 1.0, %v2065_v43  ;;  %v1913_v46 = vsel %vm1324_vm8, 1.0, %v2065_v43  ;;  %v1914_v62 = vsel %vm1325_vm11, 1.0, %v2065_v43  ;;  %v1915_v5 = vsel %vm1326_vm9, 1.0, %v2065_v43 }
 0x122   : > { %v1916_v6 = vsel %vm1327_vm0, 1.0, %v2065_v43  ;;  %v1917_v24 = vsel %vm1328_vm1, 1.0, %v2065_v43  ;;  %vm1351_vm3 = vcmp.ge.s32.totalorder %v2231_v29, %v1350_v52  ;;  %vm1352_vm5 = vcmp.ge.s32.totalorder %v2234_v30, %v1350_v52 }
 0x123   : > { %vm1353_vm4 = vcmp.ge.s32.totalorder %v2237_v31, %v1350_v52  ;;  %v1343_v11 = vadd.f32 %v1911_v2, %v1904_v61  ;;  %v1344_v4 = vadd.f32 %v1912_v3, %v1905_v63  ;;  %vm1354_vm10 = vcmp.ge.s32.totalorder %v2240_v32, %v1350_v52 }
 0x124   : > { %vm1355_vm8 = vcmp.ge.s32.totalorder %v2243_v33, %v1350_v52  ;;  %v1345_v38 = vadd.f32 %v1913_v46, %v1906_v16  ;;  %vm1356_vm9 = vcmp.ge.s32.totalorder %v2246_v34, %v1350_v52  ;;  %vm1357_vm0 = vcmp.ge.s32.totalorder %v2249_v35, %v1350_v52 }
 0x125   : > { %v1918_v37 = vsel %vm1351_vm3, 1.0, %v2065_v43  ;;  %v1346_v51 = vadd.f32 %v1914_v62, %v1907_v26  ;;  %v1347_v14 = vadd.f32 %v1915_v5, %v1908_v39  ;;  %v1919_v17 = vsel %vm1352_vm5, 1.0, %v2065_v43 }
 0x126   : > { %v1920_v18 = vsel %vm1353_vm4, 1.0, %v2065_v43  ;;  %v1348_v61 = vadd.f32 %v1916_v6, %v1909_v0  ;;  %v1349_v63 = vadd.f32 %v1917_v24, %v1910_v1  ;;  %v1921_v2 = vsel %vm1354_vm10, 1.0, %v2065_v43 }
 0x127   : > { %v1922_v3 = vsel %vm1355_vm8, 1.0, %v2065_v43  ;;  %v1923_v16 = vsel %vm1356_vm9, 1.0, %v2065_v43  ;;  %v1924_v46 = vsel %vm1357_vm0, 1.0, %v2065_v43  ;;  %v1372_v52 = vadd.f32 %v1918_v37, %v1343_v11 }
 0x128   : > { %v1373_v20 = vadd.f32 %v1919_v17, %v1344_v4  ;;  %v1374_v26 = vadd.f32 %v1920_v18, %v1345_v38  ;;  %vm1380_vm11 = vcmp.ge.s32.totalorder %v2231_v29, %v1379_v19  ;;  %vm1381_vm14 = vcmp.ge.s32.totalorder %v2234_v30, %v1379_v19 }
 0x129   : > { %vm1382_vm2 = vcmp.ge.s32.totalorder %v2237_v31, %v1379_v19  ;;  %vm1383_vm13 = vcmp.ge.s32.totalorder %v2240_v32, %v1379_v19  ;;  %vm1384_vm6 = vcmp.ge.s32.totalorder %v2243_v33, %v1379_v19  ;;  %vm1385_vm1 = vcmp.ge.s32.totalorder %v2246_v34, %v1379_v19 }
 0x12a   : > { %v1375_v39 = vadd.f32 %v1921_v2, %v1346_v51  ;;  %vm1386_vm3 = vcmp.ge.s32.totalorder %v2249_v35, %v1379_v19  ;;  %v1925_v37 = vsel %vm1380_vm11, 1.0, %v2065_v43  ;;  %v1408_v0 = vstv %s2199_s16 }
 0x12b   : > { %v1376_v17 = vadd.f32 %v1922_v3, %v1347_v14  ;;  %v1377_v18 = vadd.f32 %v1923_v16, %v1348_v61  ;;  %v1378_v38 = vadd.f32 %v1924_v46, %v1349_v63  ;;  %v1926_v1 = vsel %vm1381_vm14, 1.0, %v2065_v43 }
 0x12c   : > { %v1927_v62 = vsel %vm1382_vm2, 1.0, %v2065_v43  ;;  %v1928_v5 = vsel %vm1383_vm13, 1.0, %v2065_v43  ;;  %v1929_v6 = vsel %vm1384_vm6, 1.0, %v2065_v43  ;;  %v1930_v24 = vsel %vm1385_vm1, 1.0, %v2065_v43 }
 0x12d   : > { %v1931_v51 = vsel %vm1386_vm3, 1.0, %v2065_v43  ;;  %v1401_v11 = vadd.f32 %v1925_v37, %v1372_v52  ;;  %vm1409_vm5 = vcmp.ge.s32.totalorder %v2231_v29, %v1408_v0  ;;  %vm1410_vm4 = vcmp.ge.s32.totalorder %v2234_v30, %v1408_v0 }
 0x12e   : > { %v1402_v14 = vadd.f32 %v1926_v1, %v1373_v20  ;;  %vm1411_vm10 = vcmp.ge.s32.totalorder %v2237_v31, %v1408_v0  ;;  %vm1412_vm8 = vcmp.ge.s32.totalorder %v2240_v32, %v1408_v0  ;;  %vm1413_vm9 = vcmp.ge.s32.totalorder %v2243_v33, %v1408_v0 }
 0x12f   : > { %v1403_v19 = vadd.f32 %v1927_v62, %v1374_v26  ;;  %vm1414_vm0 = vcmp.ge.s32.totalorder %v2246_v34, %v1408_v0  ;;  %vm1415_vm11 = vcmp.ge.s32.totalorder %v2249_v35, %v1408_v0  ;;  %v1932_v4 = vsel %vm1409_vm5, 1.0, %v2065_v43 }
 0x130   : > { %vm1274_vm14 = vcmp.lt.s32.totalorder %v2240_v32, %v3273_v25  ;;  %v1404_v61 = vadd.f32 %v1928_v5, %v1375_v39  ;;  %v1405_v63 = vadd.f32 %v1929_v6, %v1376_v17  ;;  %v1406_v20 = vadd.f32 %v1930_v24, %v1377_v18 }
 0x131   : > { %v1933_v2 = vsel %vm1410_vm4, 1.0, %v2065_v43  ;;  %vm1275_vm2 = vcmp.lt.s32.totalorder %v2243_v33, %v3273_v25  ;;  %v1407_v3 = vadd.f32 %v1931_v51, %v1378_v38  ;;  %v1934_v16 = vsel %vm1411_vm10, 1.0, %v2065_v43 }
 0x132   : > { %v1935_v46 = vsel %vm1412_vm8, 1.0, %v2065_v43  ;;  %v1936_v52 = vsel %vm1413_vm9, 1.0, %v2065_v43  ;;  %vm1276_vm13 = vcmp.lt.s32.totalorder %v2246_v34, %v3273_v25  ;;  %v1937_v26 = vsel %vm1414_vm0, 1.0, %v2065_v43 }
 0x133   : > { %v1938_v39 = vsel %vm1415_vm11, 1.0, %v2065_v43  ;;  %v1430_v37 = vadd.f32 %v1932_v4, %v1401_v11  ;;  %v1437_v0 = vstv %s2201_s17  ;;  %vm1277_vm6 = vcmp.lt.s32.totalorder %v2249_v35, %v3273_v25 }
 0x134   : > { %v1431_v17 = vadd.f32 %v1933_v2, %v1402_v14  ;;  %vm1438_vm1 = vcmp.ge.s32.totalorder %v2231_v29, %v1437_v0  ;;  %vm1439_vm3 = vcmp.ge.s32.totalorder %v2234_v30, %v1437_v0  ;;  %vm1440_vm5 = vcmp.ge.s32.totalorder %v2237_v31, %v1437_v0 }
 0x135   : > { %v1432_v18 = vadd.f32 %v1934_v16, %v1403_v19  ;;  %vm1441_vm4 = vcmp.ge.s32.totalorder %v2240_v32, %v1437_v0  ;;  %vm1442_vm10 = vcmp.ge.s32.totalorder %v2243_v33, %v1437_v0  ;;  %vm1443_vm8 = vcmp.ge.s32.totalorder %v2246_v34, %v1437_v0 }
 0x136   : > { %v1433_v38 = vadd.f32 %v1935_v46, %v1404_v61  ;;  %v1434_v1 = vadd.f32 %v1936_v52, %v1405_v63  ;;  %v1939_v62 = vsel %vm1438_vm1, 1.0, %v2065_v43  ;;  %v3454_v5 = vstv %s2203_s13 }
 0x137   : > { %v1435_v6 = vadd.f32 %v1937_v26, %v1406_v20  ;;  %vm1444_vm9 = vcmp.ge.s32.totalorder %v2249_v35, %v1437_v0  ;;  %v1940_v24 = vsel %vm1439_vm3, 1.0, %v2065_v43  ;;  %v1941_v51 = vsel %vm1440_vm5, 1.0, %v2065_v43 }
 0x138   : > { %v1436_v11 = vadd.f32 %v1938_v39, %v1407_v3  ;;  %v1942_v14 = vsel %vm1441_vm4, 1.0, %v2065_v43  ;;  %v1943_v19 = vsel %vm1442_vm10, 1.0, %v2065_v43  ;;  %v1944_v4 = vsel %vm1443_vm8, 1.0, %v2065_v43 }
 0x139   : > { %v1459_v61 = vadd.f32 %v1939_v62, %v1430_v37  ;;  %vm1467_vm0 = vcmp.ge.s32.totalorder %v2231_v29, %v3454_v5  ;;  %vm3652_vm11 = vcmp.ge.s32.totalorder %v2234_v30, %v3454_v5  ;;  %vm3656_vm1 = vcmp.ge.s32.totalorder %v2237_v31, %v3454_v5 }
 0x13a   : > { %v1945_v63 = vsel %vm1444_vm9, 1.0, %v2065_v43  ;;  %v1460_v20 = vadd.f32 %v1940_v24, %v1431_v17  ;;  %v1461_v2 = vadd.f32 %v1941_v51, %v1432_v18  ;;  %vm3654_vm3 = vcmp.ge.s32.totalorder %v2240_v32, %v3454_v5 }
 0x13b   : > { %vm3653_vm5 = vcmp.ge.s32.totalorder %v2243_v33, %v3454_v5  ;;  %vm3655_vm4 = vcmp.ge.s32.totalorder %v2246_v34, %v3454_v5  ;;  %v1946_v3 = vsel %vm1467_vm0, 1.0, %v2065_v43  ;;  %v1947_v16 = vsel %vm3652_vm11, 1.0, %v2065_v43 }
 0x13c   : > { %vm3729_vm10 = vcmp.ge.s32.totalorder %v2240_v32, %v3260_v47  ;;  %v1462_v52 = vadd.f32 %v1942_v14, %v1433_v38  ;;  %v1463_v26 = vadd.f32 %v1943_v19, %v1434_v1  ;;  %v1464_v39 = vadd.f32 %v1944_v4, %v1435_v6 }
 0x13d   : > { %vm3489_vm8 = vmand %vm3729_vm10, %vm1274_vm14  ;;  %v1948_v37 = vsel %vm3656_vm1, 1.0, %v2065_v43  ;;  %vm3732_vm9 = vcmp.ge.s32.totalorder %v2243_v33, %v3260_v47  ;;  %v1465_v17 = vadd.f32 %v1945_v63, %v1436_v11  ;;  %vm3657_vm14 = vcmp.ge.s32.totalorder %v2249_v35, %v3454_v5 }
 0x13e   : > { %vm3503_vm11 = vmand %vm3732_vm9, %vm1275_vm2  ;;  %v1949_v18 = vsel %vm3654_vm3, 1.0, %v2065_v43  ;;  %v1488_v38 = vadd.f32 %v1946_v3, %v1459_v61  ;;  %vm3735_vm10 = vcmp.ge.s32.totalorder %v2246_v34, %v3260_v47  ;;  %v1950_v62 = vsel %vm3653_vm5, 1.0, %v2065_v43 }
 0x13f   : > { %vm3519_vm2 = vmand %vm3735_vm10, %vm1276_vm13  ;;  %v1951_v6 = vsel %vm3655_vm4, 1.0, %v2065_v43  ;;  %v1489_v24 = vadd.f32 %v1947_v16, %v1460_v20  ;;  %v1495_v51 = vstv %s3728_s1  ;;  %vm3738_vm13 = vcmp.ge.s32.totalorder %v2249_v35, %v3260_v47 }
 0x140   : > { %vm3538_vm9 = vmand %vm3738_vm13, %vm1277_vm6  ;;  %v1490_v14 = vadd.f32 %v1948_v37, %v1461_v2  ;;  %vm1496_vm10 = vcmp.lt.s32.totalorder %v2231_v29, %v1495_v51  ;;  %vm1497_vm5 = vcmp.lt.s32.totalorder %v2234_v30, %v1495_v51  ;;  %vm1498_vm3 = vcmp.lt.s32.totalorder %v2237_v31, %v1495_v51 }
 0x141   : > { %v1288_v19 = vsel %vm3489_vm8, %v2936_v55, %v3343_v15  ;;  %v1952_v47 = vsel %vm3657_vm14, 1.0, %v2065_v43  ;;  %v1491_v25 = vadd.f32 %v1949_v18, %v1462_v52  ;;  %vm1499_vm6 = vcmp.lt.s32.totalorder %v2240_v32, %v1495_v51  ;;  %vm1503_vm13 = vmand %vm1467_vm0, %vm1496_vm10 }
 0x142   : > { %v1289_v4 = vsel %vm3503_vm11, %v2950_v58, %v3345_v53  ;;  %v1492_v61 = vadd.f32 %v1950_v62, %v1463_v26  ;;  %vm1500_vm8 = vcmp.lt.s32.totalorder %v2243_v33, %v1495_v51  ;;  %vm3741_vm4 = vcmp.ge.s32.totalorder %v2234_v30, %v3454_v5 }
 0x143   : > { %vm1504_vm1 = vmand %vm3741_vm4, %vm1497_vm5  ;;  %v1510_v43 = vsel %vm1503_vm13, %v3091_v8, %v1488_v38  ;;  %v1493_v55 = vadd.f32 %v1951_v6, %v1464_v39  ;;  %vm1501_vm14 = vcmp.lt.s32.totalorder %v2246_v34, %v1495_v51  ;;  %vm3742_vm0 = vcmp.ge.s32.totalorder %v2237_v31, %v3454_v5 }
 0x144   : > { %vm1505_vm10 = vmand %vm3742_vm0, %vm1498_vm3  ;;  %v1511_v29 = vsel %vm1504_vm1, %v3097_v7, %v1489_v24  ;;  %v3743_v58 = vsel %vm3320_vm12, %v2919_v9, %v3315_v40  ;;  %v1494_v53 = vadd.f32 %v1952_v47, %v1465_v17  ;;  %vm1502_vm11 = vcmp.lt.s32.totalorder %v2249_v35, %v1495_v51 }
 0x145   : > { %v1517_v15 = vsub.f32 %v3743_v58, %v1510_v43  ;;  %vm3744_vm5 = vcmp.ge.s32.totalorder %v2240_v32, %v3454_v5  ;;  %v1512_v30 = vsel %vm1505_vm10, %v3106_v10, %v1490_v14  ;;  %v3745_v31 = vsel %vm3331_vm7, %v2922_v42, %v3324_v59 }
 0x146   : > { %vm1506_vm4 = vmand %vm3744_vm5, %vm1499_vm6  ;;  %v1518_v8 = vsub.f32 %v3745_v31, %v1511_v29  ;;  %v1290_v9 = vsel %vm3519_vm2, %v3079_v54, %v3347_v44  ;;  %vm3746_vm12 = vcmp.ge.s32.totalorder %v2243_v33, %v3454_v5  ;;  %v3747_v7 = vsel %vm3339_vm15, %v2927_v41, %v3326_v57 }
 0x147   : > { %vm1507_vm1 = vmand %vm3746_vm12, %vm1500_vm8  ;;  %v1513_v32 = vsel %vm1506_vm4, %v3119_v36, %v1491_v25  ;;  %v1519_v10 = vsub.f32 %v3747_v7, %v1512_v30  ;;  %v1524_v40 = vmul.f32 %v1517_v15, %v1517_v15  ;;  %vm3748_vm7 = vcmp.ge.s32.totalorder %v2246_v34, %v3454_v5 }
 0x148   : > { %vm1508_vm3 = vmand %vm3748_vm7, %vm1501_vm14  ;;  %v1514_v42 = vsel %vm1507_vm1, %v3128_v60, %v1492_v61  ;;  %v1520_v54 = vsub.f32 %v1288_v19, %v1513_v32  ;;  %v1525_v56 = vmul.f32 %v1518_v8, %v1518_v8  ;;  %v1291_v33 = vsel %vm3538_vm9, %v3114_v12, %v3349_v49 }
 0x149   : > { %vm3749_vm2 = vcmp.ge.s32.totalorder %v2249_v35, %v3454_v5  ;;  %v1515_v41 = vsel %vm1508_vm3, %v3136_v27, %v1493_v55  ;;  %v1521_v36 = vsub.f32 %v1289_v4, %v1514_v42  ;;  %v1526_v59 = vmul.f32 %v1519_v10, %v1519_v10 }
 0x14a   : > { %vm1509_vm6 = vmand %vm3749_vm2, %vm1502_vm11  ;;  %v1522_v57 = vsub.f32 %v1290_v9, %v1515_v41  ;;  %v1527_v28 = vmul.f32 %v1520_v54, %v1520_v54  ;;  %v1531_v60 = vadd.f32 %v1525_v56, %v1524_v40  ;;  %v3751_v24 = vmov %v3718_v48 }
 0x14b   : > { %v1516_v34 = vsel %vm1509_vm6, %v3142_v45, %v1494_v53  ;;  %v1528_v44 = vmul.f32 %v1521_v36, %v1521_v36  ;;  %v3752_v25 = vmov %v3699_v50  ;;  %v1538_v27 = vrot.slane (%p109_p8), %v3699_v50, 4 }
 0x14c   : > { %v1523_v13 = vsub.f32 %v1291_v33, %v1516_v34  ;;  %v1532_v63 = vadd.f32 %v1531_v60, %v1526_v59  ;;  %v1529_v20 = vmul.f32 %v1522_v57, %v1522_v57  ;;  %v1544_v45 = vrot.slane (%p109_p8), %v3718_v48, 4 }
 0x14d   :  { %v1539_v46 = vadd.f32 (%p109_p8), %v1538_v27, %v3699_v50  ;;  %vm1556_vm15 = vcmask (%p109_p8), 1040384   ;;  %vm1558_vm14 = vcmask (%p109_p8), 1041408   ;;  %vm1560_vm9 = vcmask (%p109_p8), 1042432  }
 0x14e   : > { %v1533_v2 = vadd.f32 %v1532_v63, %v1527_v28  ;;  %v1530_v3 = vmul.f32 %v1523_v13, %v1523_v13  ;;  %v1545_v52 = vadd.f32 (%p109_p8), %v1544_v45, %v3718_v48  ;;  %vm1571_vm8 = vcmask (%p109_p8), 2048  }
 0x14f   :  { %v1540_v39 = vrot.slane (%p109_p8), %v1539_v46, 2 }
 0x150   : > { %v1534_v12 = vadd.f32 %v1533_v2, %v1528_v44  ;;  %v1546_v37 = vrot.slane (%p109_p8), %v1545_v52, 2 }
 0x151   :  { %v1541_v17 = vadd.f32 (%p109_p8), %v1540_v39, %v1539_v46 }
 0x152   : > { %v1535_v49 = vadd.f32 %v1534_v12, %v1529_v20  ;;  %111 = sbr.rel (!%p109_p8) target bundleno = 68 (0x44), region = 44  ;;  %v1547_v18 = vadd.f32 (%p109_p8), %v1546_v37, %v1545_v52 }
 0x153   :  { %v1542_v1 = vrot.slane (%p109_p8), %v1541_v17, 1 }
 0x154   : > { %v1536_v16 = vadd.f32 %v1535_v49, %v1530_v3  ;;  %v1548_v62 = vrot.slane (%p109_p8), %v1547_v18, 1 }
 0x155   :  { %v1543_v21 = vadd.f32 (%p109_p8), %v1542_v1, %v1541_v17 }
 0x156   : > { %v1537_v35 = vadd.f32 %v2049_v23, %v1536_v16   ;;  %v1549_v22 = vadd.f32 (%p109_p8), %v1548_v62, %v1547_v18 }
 0x158   : > { %v3750_v23 = vmov %v1537_v35  ;;  %v1550_v5 = vrot.slane (%p109_p8), %v1537_v35, 4  ;;  %v1557_v24 = vsel (%p109_p8), %vm1556_vm15, %v1543_v21, %v1549_v22 }
 0x15a   :  { %v1551_v26 = vadd.f32 %v1550_v5, %v1537_v35 }
 0x15c   :  { %v1552_v0 = vrot.slane %v1551_v26, 2 }
 0x15e   :  { %v1553_v38 = vadd.f32 %v1552_v0, %v1551_v26 }
 0x160   :  { %v1554_v6 = vrot.slane %v1553_v38, 1 }
 0x162   :  { %v1555_v23 = vadd.f32 %v1554_v6, %v1553_v38 }
 0x164   :  { %v1559_v50 = vsel %vm1558_vm14, %v1557_v24, %v1555_v23 }
 0x165   :  { %v1561_v51 = vsel %vm1560_vm9, %v1559_v50, 0.0 }
 0x166   :  { %1562 = vadd.xlane.f32.xlu0 %v1561_v51 }
 0x1f3   :  { %v1563_v48 = vpop.xlane.xlu0 %1562 }
 0x1f4   :  { %1991 = vrsqrt.f32 %v1563_v48  ;;  %vm1566_vm13 = vcmp.eq.f32.partialorder %v1563_v48, inf  ;;  %v1569_v19 = vand.u32 2147483648, %v1563_v48  ;;  %vm1568_vm0 = vcmp.eq.f32.partialorder %v1563_v48, 0.0 }
 0x1fe   :  { %v1992_v11 = vpop.eup %1991 }
 0x1ff   :  { %v1565_v14 = vmul.f32 %v1992_v11, %v1563_v48 }
 0x201   :  { %v1567_v47 = vsel %vm1566_vm13, %v1563_v48, %v1565_v14 }
 0x202   :  { %v1570_v25 = vsel %vm1568_vm0, %v1569_v19, %v1567_v47 }
 0x203   :  { %v1572_v4 = vsel %vm1571_vm8, %v1570_v25, 0.0 }
 0x204   :  { %1573 = vadd.xlane.f32.xlu0 %v1572_v4 }
 0x291   :  { %v1574_v61 = vpop.xlane.xlu0 %1573 }
 0x292   :  { %v1575_v43 = vrot.slane %v1574_v61, 4 }
 0x294   :  { %v1576_v55 = vadd.f32 %v1575_v43, %v1574_v61 }
 0x296   :  { %v1577_v29 = vrot.slane %v1576_v55, 2 }
 0x298   :  { %v1578_v58 = vadd.f32 %v1577_v29, %v1576_v55 }
 0x29a   :  { %v1579_v15 = vrot.slane %v1578_v58, 1 }
 0x29c   :  { %v1580_v53 = vadd.f32 %v1579_v15, %v1578_v58 }
 0x29e   :  { %1953 = vpush %v1580_v53 }
 0x2cf   :  { %s1954_s23 = spop %1953 }
 0x2d0   :  { %1583 = sst [smem:[#allocation7]] %s1954_s23 }
 0x2d1   :  { %2024 = shalt.err (!%p2021_p11)
}
 0x2d2   :  { %s2066_s4 = smov [#allocation7]  }
 0x2d3   :  { %1591 = dma.smem_to_hbm %s2066_s4, 16, %s3753_s26, [#allocation4]  }
 0x2d4   :  { %2045 = dma.done.wait [#allocation4], 16  }
 0x2d5   :  { %2046 = vsyncadd [#allocation4], 4294967280 }
 0x2d6   :  { %1595 = sfence }
 0x2d7   :  { %1596 = vsyncpa [#allocation3], 1 }
 0x2d8   :  { %1597 = vsyncpa [#allocation4], 1 }
 0x2d9   :  { %1598 = vsyncpa [#allocation5], 1 }

</bundles_post_ra>
